<compile_context>
chip_gen: v6e
topology: v6e:2x2x1
jax: 0.10.0
libtpu: 0.0.40
codegen_flags: <defaults>
</compile_context>

<pallas_src>
import jax
import jax.numpy as jnp
from jax import lax
from jax.experimental import pallas as pl
from jax.experimental.pallas import tpu as pltpu


# ----------------------------- kernel helpers ------------------------------

def _ksigmoid(x):
    # exp -> EUP, approx reciprocal -> EUP slot (near-free vs. a VALU divide).
    return pl.reciprocal(1.0 + jnp.exp(-x), approx=True)


def _keypress_gru_kernel(
    x_ref,       # (T_chunk, 2, tile_b, D)  bf16  time-major input chunk
    wx_ref,      # (D, 3H)  bf16   [W_ir | W_iz | W_in]
    wh_ref,      # (H, 3H)  bf16   [W_hr | W_hz | W_hn]
    bx_ref,      # (1, 3H)  f32    [b_ir+b_hr | b_iz+b_hz | b_in]
    bhn_ref,     # (1, H)   f32    b_hn (kept separate: lives inside r*(...))
    wf1_ref,     # (H, F)   f32
    bf1_ref,     # (1, F)   f32
    wf2_ref,     # (1, F)   f32    PyTorch (out,in) layout -> lane reduction
    bf2_ref,     # (1, 1)   f32
    o_ref,       # (tile_b, 1)     output (written once, at the last chunk)
    h_ref,       # scratch (2*tile_b, H) f32 hidden-state carry (both branches)
    xp_ref,      # scratch (T_chunk, 2*tile_b, 3H) f32 hoisted input projection
):
    tc = pl.program_id(1)
    n_tc = pl.num_programs(1)
    t_chunk, _, tile_b, d = x_ref.shape
    h_dim = wh_ref.shape[0]

    @pl.when(tc == 0)
    def _():
        h_ref[...] = jnp.zeros_like(h_ref)

    wh = wh_ref[...]
    bx = bx_ref[...]
    b_hn = bhn_ref[...]

    # ---- Chunk preamble: K=D input projection, off the recurrent chain.
    # Independent across timesteps, so the MXU pipelines these back to back.
    def project(t, carry):
        x_t = x_ref[t].reshape(2 * tile_b, d)                      # bf16
        proj = jnp.dot(x_t, wx_ref[...],
                       preferred_element_type=jnp.float32) + bx    # (2B, 3H)
        xp_ref[pl.ds(t, 1), :, :] = proj[None]
        return carry

    lax.fori_loop(0, t_chunk, project, 0, unroll=True)

    # ---- Serial recurrence: one fused (2*tile_b, H) @ (H, 3H) matmul / step.
    def step(t, carry):
        h_prev = h_ref[...]                                        # f32
        gh = jnp.dot(h_prev.astype(jnp.bfloat16), wh,
                     preferred_element_type=jnp.float32)           # (2B, 3H)
        xp = xp_ref[t]                                             # (2B, 3H)
        r = _ksigmoid(xp[:, :h_dim] + gh[:, :h_dim])
        z = _ksigmoid(xp[:, h_dim:2 * h_dim] + gh[:, h_dim:2 * h_dim])
        n = jnp.tanh(xp[:, 2 * h_dim:] + r * (gh[:, 2 * h_dim:] + b_hn))
        h_ref[...] = (1.0 - z) * n + z * h_prev
        return carry

    lax.fori_loop(0, t_chunk, step, 0, unroll=True)

    # ---- Siamese head after the last timestep of the sequence.
    @pl.when(tc == n_tc - 1)
    def _():
        h = h_ref[...]
        diff = jnp.abs(h[:tile_b] - h[tile_b:])                    # (tile_b, H)
        hid = jnp.maximum(
            jnp.dot(diff, wf1_ref[...], preferred_element_type=jnp.float32)
            + bf1_ref[...], 0.0)
        # Final Linear(32,1) as a lane reduction (avoids a 1-wide matmul).
        logit = jnp.sum(hid * wf2_ref[...], axis=-1, keepdims=True) + bf2_ref[...]
        o_ref[...] = _ksigmoid(logit).astype(o_ref.dtype)


# ------------------------------ tiling logic -------------------------------

def _round_up(x, m):
    return ((x + m - 1) // m) * m


def _choose_batch_tiling(batch):
    """Batch tile (multiple of 8 sublanes) + padded batch with >=2 tiles so
    the 'parallel' grid axis can shard across v7x's two TensorCores."""
    if batch >= 512:
        tile_b = 256
    elif batch >= 128:
        tile_b = 128
    else:
        tile_b = _round_up(max(batch // 2, 1), 8)
    b_pad = _round_up(batch, tile_b)
    if b_pad // tile_b < 2:
        b_pad = 2 * tile_b
    return tile_b, b_pad


def _choose_time_chunk(seq_len, max_chunk=16):
    """Largest chunk that divides seq_len (avoids masking partial chunks)."""
    if seq_len <= max_chunk:
        return seq_len
    best = 1
    for c in range(2, max_chunk + 1):
        if seq_len % c == 0:
            best = c
    return best


# ------------------------------ parameter prep -----------------------------

def _pack_params(params):
    """Fold PyTorch-style per-gate params into fused kernel operands."""
    (w_ir, w_iz, w_in, w_hr, w_hz, w_hn, b_r, b_z, b_in, b_hn,
     w_f1, b_f1, w_f2, b_f2) = params
    wx = jnp.concatenate([w_ir, w_iz, w_in], axis=1).astype(jnp.bfloat16)
    wh = jnp.concatenate([w_hr, w_hz, w_hn], axis=1).astype(jnp.bfloat16)
    bx = jnp.concatenate([b_r, b_z, b_in], axis=1).astype(jnp.float32)
    return (wx, wh, bx, b_hn.astype(jnp.float32), w_f1.astype(jnp.float32),
            b_f1.astype(jnp.float32), w_f2.astype(jnp.float32),
            b_f2.astype(jnp.float32))


# --------------------------------- wrapper ----------------------------------

def keypress_gru_forward(x1, x2, params):
    """KeypressGRU.forward(x1, x2) -> (batch, 1) similarity score."""
    assert x1.shape == x2.shape and x1.dtype == x2.dtype
    batch, seq_len, input_dim = x1.shape
    wx, wh, bx, b_hn, w_f1, b_f1, w_f2, b_f2 = _pack_params(params)
    hidden_dim = wh.shape[0]
    fc_hidden = w_f1.shape[1]

    tile_b, b_pad = _choose_batch_tiling(batch)
    n_b = b_pad // tile_b
    t_chunk = _choose_time_chunk(seq_len)
    n_tc = seq_len // t_chunk

    # (B,T,D) x2 -> (T, 2, B_pad, D) bf16 time-major so each grid step DMAs one
    # contiguous chunk slab and the in-kernel xp scratch stays time-major.
    # D=3, so this transpose touches almost no HBM.
    x = jnp.stack([x1, x2], axis=0)                           # (2, B, T, D)
    if b_pad != batch:
        x = jnp.pad(x, ((0, 0), (0, b_pad - batch), (0, 0), (0, 0)))
    x = jnp.transpose(x, (2, 0, 1, 3)).astype(jnp.bfloat16)   # (T, 2, B_pad, D)

    weights = (wx, wh, bx, b_hn, w_f1, b_f1, w_f2, b_f2)
    # Constant index_maps -> weights are fetched once and stay VMEM-resident.
    w_specs = [pl.BlockSpec(w.shape, lambda i, t: (0, 0)) for w in weights]

    gru_flops = 2 * (2 * b_pad) * seq_len * (input_dim + hidden_dim) * 3 * hidden_dim
    head_flops = 2 * b_pad * hidden_dim * fc_hidden
    cost = pl.CostEstimate(
        flops=int(gru_flops + head_flops),
        transcendentals=int((2 * b_pad) * seq_len * 3 * hidden_dim + b_pad),
        bytes_accessed=int(x.size * 2
                           + sum(w.size * w.dtype.itemsize for w in weights)
                           + b_pad * 4),
    )

    out = pl.pallas_call(
        _keypress_gru_kernel,
        out_shape=jax.ShapeDtypeStruct((b_pad, 1), jnp.float32),
        grid=(n_b, n_tc),
        in_specs=[pl.BlockSpec((t_chunk, 2, tile_b, input_dim),
                               lambda i, t: (t, 0, i, 0))] + w_specs,
        out_specs=pl.BlockSpec((tile_b, 1), lambda i, t: (i, 0)),
        scratch_shapes=[
            pltpu.VMEM((2 * tile_b, hidden_dim), jnp.float32),
            pltpu.VMEM((t_chunk, 2 * tile_b, 3 * hidden_dim), jnp.float32),
        ],
        compiler_params=pltpu.CompilerParams(
            dimension_semantics=("parallel", "arbitrary"),
            vmem_limit_bytes=32 * 1024 * 1024),
        cost_estimate=cost,
    )(x, *weights)

    return out[:batch].astype(x1.dtype)


# --------------------------- init & pure-JAX reference ----------------------

def init_params(key, input_dim=3, hidden_dim=64, fc_hidden=32, dtype=jnp.float32):
    """Deterministic synthetic init, (in, out) weight layout; b_r/b_z already
    fold PyTorch's b_i* + b_h*; final Linear kept as (out, in) = (1, 32)."""
    ks = jax.random.split(key, 14)
    s = hidden_dim ** -0.5
    s2 = fc_hidden ** -0.5

    def u(k, shape, scale):
        return jax.random.uniform(k, shape, dtype, -scale, scale)

    w_ir = u(ks[0], (input_dim, hidden_dim), s)
    w_iz = u(ks[1], (input_dim, hidden_dim), s)
    w_in = u(ks[2], (input_dim, hidden_dim), s)
    w_hr = u(ks[3], (hidden_dim, hidden_dim), s)
    w_hz = u(ks[4], (hidden_dim, hidden_dim), s)
    w_hn = u(ks[5], (hidden_dim, hidden_dim), s)
    b_r = u(ks[6], (1, hidden_dim), s)
    b_z = u(ks[7], (1, hidden_dim), s)
    b_in = u(ks[8], (1, hidden_dim), s)
    b_hn = u(ks[9], (1, hidden_dim), s)
    w_f1 = u(ks[10], (hidden_dim, fc_hidden), s)
    b_f1 = u(ks[11], (1, fc_hidden), s)
    w_f2 = u(ks[12], (1, fc_hidden), s2)
    b_f2 = u(ks[13], (1, 1), s2)
    return (w_ir, w_iz, w_in, w_hr, w_hz, w_hn, b_r, b_z, b_in, b_hn,
            w_f1, b_f1, w_f2, b_f2)


def _ref_sigmoid(x):
    return 1.0 / (1.0 + jnp.exp(-x))


def _reference(x1, x2, params):
    (w_ir, w_iz, w_in, w_hr, w_hz, w_hn, b_r, b_z, b_in, b_hn,
     w_f1, b_f1, w_f2, b_f2) = params
    hp = jax.lax.Precision.HIGHEST

    def last_h(x):
        h0 = jnp.zeros((x.shape[0], w_hr.shape[0]), jnp.float32)

        def step(h, x_t):
            r = _ref_sigmoid(jnp.dot(x_t, w_ir, precision=hp)
                             + jnp.dot(h, w_hr, precision=hp) + b_r)
            z = _ref_sigmoid(jnp.dot(x_t, w_iz, precision=hp)
                             + jnp.dot(h, w_hz, precision=hp) + b_z)
            n = jnp.tanh(jnp.dot(x_t, w_in, precision=hp) + b_in
                         + r * (jnp.dot(h, w_hn, precision=hp) + b_hn))
            return (1.0 - z) * n + z * h, None

        h, _ = jax.lax.scan(step, h0, jnp.swapaxes(x, 0, 1))
        return h

    diff = jnp.abs(last_h(x1) - last_h(x2))
    hid = jnp.maximum(jnp.dot(diff, w_f1, precision=hp) + b_f1, 0.0)
    logit = jnp.sum(hid * w_f2, axis=-1, keepdims=True) + b_f2
    return _ref_sigmoid(logit)


if __name__ == "__main__":
    batch, seq_len, input_dim, hidden_dim = 4, 8, 3, 64

    key = jax.random.PRNGKey(0)
    kx1, kx2, kp = jax.random.split(key, 3)
    x1 = jax.random.normal(kx1, (batch, seq_len, input_dim), jnp.float32)
    x2 = jax.random.normal(kx2, (batch, seq_len, input_dim), jnp.float32)
    params = init_params(kp, input_dim, hidden_dim)

    out = keypress_gru_forward(x1, x2, params)
    jax.block_until_ready(out)

    ref = _reference(x1, x2, params)
    assert out.shape == (batch, 1)
    # bf16 matmul operands (f32 accumulation + f32 hidden carry) and the EUP
    # approx reciprocal in the sigmoids -> slightly looser tolerance vs. the
    # full-f32 reference.
    assert jnp.allclose(out, ref, atol=2e-2, rtol=2e-2), (
        float(jnp.max(jnp.abs(out - ref))))

    print("KERNEL_OK")
</pallas_src>

<mosaic_0001>
module attributes {stable_mosaic.version = 11 : i64} {
  func.func @_keypress_gru_kernel(%arg0: i32, %arg1: i32, %arg2: memref<8x2x8x3xbf16, #tpu.memory_space<vmem>>, %arg3: memref<3x192xbf16, #tpu.memory_space<vmem>>, %arg4: memref<64x192xbf16, #tpu.memory_space<vmem>>, %arg5: memref<1x192xf32, #tpu.memory_space<vmem>>, %arg6: memref<1x64xf32, #tpu.memory_space<vmem>>, %arg7: memref<64x32xf32, #tpu.memory_space<vmem>>, %arg8: memref<1x32xf32, #tpu.memory_space<vmem>>, %arg9: memref<1x32xf32, #tpu.memory_space<vmem>>, %arg10: memref<1x1xf32, #tpu.memory_space<vmem>>, %arg11: memref<8x1xf32, #tpu.memory_space<vmem>>, %arg12: memref<16x64xf32, #tpu.memory_space<vmem>>, %arg13: memref<8x16x192xf32, #tpu.memory_space<vmem>>) attributes {dimension_semantics = [#tpu.dimension_semantics<parallel>, #tpu.dimension_semantics<arbitrary>], iteration_bounds = array<i64: 2, 1>, scalar_prefetch = 0 : i64, scratch_operands = 2 : i64, tpu.core_type = #tpu.core_type<tc>, window_params = [{transform_indices = @transform_0, window_bounds = array<i64: 8, 2, 8, 3>}, {pipeline_mode = #tpu.pipeline_mode<synchronous>, transform_indices = @transform_1, window_bounds = array<i64: 3, 192>}, {pipeline_mode = #tpu.pipeline_mode<synchronous>, transform_indices = @transform_2, window_bounds = array<i64: 64, 192>}, {pipeline_mode = #tpu.pipeline_mode<synchronous>, transform_indices = @transform_3, window_bounds = array<i64: 1, 192>}, {pipeline_mode = #tpu.pipeline_mode<synchronous>, transform_indices = @transform_4, window_bounds = array<i64: 1, 64>}, {pipeline_mode = #tpu.pipeline_mode<synchronous>, transform_indices = @transform_5, window_bounds = array<i64: 64, 32>}, {pipeline_mode = #tpu.pipeline_mode<synchronous>, transform_indices = @transform_6, window_bounds = array<i64: 1, 32>}, {pipeline_mode = #tpu.pipeline_mode<synchronous>, transform_indices = @transform_7, window_bounds = array<i64: 1, 32>}, {pipeline_mode = #tpu.pipeline_mode<synchronous>, transform_indices = @transform_8, window_bounds = array<i64: 1, 1>}, {transform_indices = @transform_9, window_bounds = array<i64: 8, 1>}]} {
    %c0_i32 = arith.constant 0 : i32
    %0 = arith.cmpi eq, %arg1, %c0_i32 : i32
    %1 = arith.extui %0 : i1 to i32
    %c0_i32_0 = arith.constant 0 : i32
    %2 = arith.cmpi ne, %1, %c0_i32_0 : i32
    scf.if %2 {
      %cst_177 = arith.constant 0.000000e+00 : f32
      %393 = vector.broadcast %cst_177 : f32 to vector<16x64xf32>
      %c0_178 = arith.constant 0 : index
      %c0_179 = arith.constant 0 : index
      %394 = vector.load %arg12[%c0_178, %c0_179] : memref<16x64xf32, #tpu.memory_space<vmem>>, vector<16x64xf32>
      tpu.vector_store %arg12[%c0_178, %c0_179], %393 {strides = array<i32>} : memref<16x64xf32, #tpu.memory_space<vmem>>, vector<16x64xf32>,
    } else {
    }
    %c0 = arith.constant 0 : index
    %c0_1 = arith.constant 0 : index
    %3 = vector.load %arg4[%c0, %c0_1] : memref<64x192xbf16, #tpu.memory_space<vmem>>, vector<64x192xbf16>
    %c0_2 = arith.constant 0 : index
    %c0_3 = arith.constant 0 : index
    %4 = vector.load %arg5[%c0_2, %c0_3] : memref<1x192xf32, #tpu.memory_space<vmem>>, vector<1x192xf32>
    %c0_4 = arith.constant 0 : index
    %c0_5 = arith.constant 0 : index
    %5 = vector.load %arg6[%c0_4, %c0_5] : memref<1x64xf32, #tpu.memory_space<vmem>>, vector<1x64xf32>
    %c0_i32_6 = arith.constant 0 : i32
    %6 = arith.index_cast %c0_i32_6 : i32 to index
    %c0_7 = arith.constant 0 : index
    %c0_8 = arith.constant 0 : index
    %c0_9 = arith.constant 0 : index
    %7 = vector.load %arg2[%6, %c0_7, %c0_8, %c0_9] : memref<8x2x8x3xbf16, #tpu.memory_space<vmem>>, vector<1x2x8x3xbf16>
    %8 = vector.shape_cast %7 : vector<1x2x8x3xbf16> to vector<2x8x3xbf16>
    %9 = vector.shape_cast %8 : vector<2x8x3xbf16> to vector<16x3xbf16>
    %c0_10 = arith.constant 0 : index
    %c0_11 = arith.constant 0 : index
    %10 = vector.load %arg3[%c0_10, %c0_11] : memref<3x192xbf16, #tpu.memory_space<vmem>>, vector<3x192xbf16>
    %cst = arith.constant dense<0.000000e+00> : vector<16x192xf32>
    %11 = tpu.matmul %9, %10, %cst {dimension_numbers = #tpu.dot_dimension_numbers<[1], [0], [0], [1], [0, 0, 1, 1], [], []>} : vector<16x3xbf16>, vector<3x192xbf16>, vector<16x192xf32> -> vector<16x192xf32>
    %12 = vector.broadcast %4 : vector<1x192xf32> to vector<16x192xf32>
    %13 = arith.addf %11, %12 : vector<16x192xf32>
    %14 = vector.shape_cast %13 : vector<16x192xf32> to vector<1x16x192xf32>
    %15 = arith.index_cast %c0_i32_6 : i32 to index
    %c0_12 = arith.constant 0 : index
    %c0_13 = arith.constant 0 : index
    %16 = vector.load %arg13[%15, %c0_12, %c0_13] : memref<8x16x192xf32, #tpu.memory_space<vmem>>, vector<1x16x192xf32>
    tpu.vector_store %arg13[%15, %c0_12, %c0_13], %14 {strides = array<i32>} : memref<8x16x192xf32, #tpu.memory_space<vmem>>, vector<1x16x192xf32>,
    %c1_i32 = arith.constant 1 : i32
    %17 = arith.index_cast %c1_i32 : i32 to index
    %c0_14 = arith.constant 0 : index
    %c0_15 = arith.constant 0 : index
    %c0_16 = arith.constant 0 : index
    %18 = vector.load %arg2[%17, %c0_14, %c0_15, %c0_16] : memref<8x2x8x3xbf16, #tpu.memory_space<vmem>>, vector<1x2x8x3xbf16>
    %19 = vector.shape_cast %18 : vector<1x2x8x3xbf16> to vector<2x8x3xbf16>
    %20 = vector.shape_cast %19 : vector<2x8x3xbf16> to vector<16x3xbf16>
    %c0_17 = arith.constant 0 : index
    %c0_18 = arith.constant 0 : index
    %21 = vector.load %arg3[%c0_17, %c0_18] : memref<3x192xbf16, #tpu.memory_space<vmem>>, vector<3x192xbf16>
    %cst_19 = arith.constant dense<0.000000e+00> : vector<16x192xf32>
    %22 = tpu.matmul %20, %21, %cst_19 {dimension_numbers = #tpu.dot_dimension_numbers<[1], [0], [0], [1], [0, 0, 1, 1], [], []>} : vector<16x3xbf16>, vector<3x192xbf16>, vector<16x192xf32> -> vector<16x192xf32>
    %23 = vector.broadcast %4 : vector<1x192xf32> to vector<16x192xf32>
    %24 = arith.addf %22, %23 : vector<16x192xf32>
    %25 = vector.shape_cast %24 : vector<16x192xf32> to vector<1x16x192xf32>
    %26 = arith.index_cast %c1_i32 : i32 to index
    %c0_20 = arith.constant 0 : index
    %c0_21 = arith.constant 0 : index
    %27 = vector.load %arg13[%26, %c0_20, %c0_21] : memref<8x16x192xf32, #tpu.memory_space<vmem>>, vector<1x16x192xf32>
    tpu.vector_store %arg13[%26, %c0_20, %c0_21], %25 {strides = array<i32>} : memref<8x16x192xf32, #tpu.memory_space<vmem>>, vector<1x16x192xf32>,
    %c2_i32 = arith.constant 2 : i32
    %28 = arith.index_cast %c2_i32 : i32 to index
    %c0_22 = arith.constant 0 : index
    %c0_23 = arith.constant 0 : index
    %c0_24 = arith.constant 0 : index
    %29 = vector.load %arg2[%28, %c0_22, %c0_23, %c0_24] : memref<8x2x8x3xbf16, #tpu.memory_space<vmem>>, vector<1x2x8x3xbf16>
    %30 = vector.shape_cast %29 : vector<1x2x8x3xbf16> to vector<2x8x3xbf16>
    %31 = vector.shape_cast %30 : vector<2x8x3xbf16> to vector<16x3xbf16>
    %c0_25 = arith.constant 0 : index
    %c0_26 = arith.constant 0 : index
    %32 = vector.load %arg3[%c0_25, %c0_26] : memref<3x192xbf16, #tpu.memory_space<vmem>>, vector<3x192xbf16>
    %cst_27 = arith.constant dense<0.000000e+00> : vector<16x192xf32>
    %33 = tpu.matmul %31, %32, %cst_27 {dimension_numbers = #tpu.dot_dimension_numbers<[1], [0], [0], [1], [0, 0, 1, 1], [], []>} : vector<16x3xbf16>, vector<3x192xbf16>, vector<16x192xf32> -> vector<16x192xf32>
    %34 = vector.broadcast %4 : vector<1x192xf32> to vector<16x192xf32>
    %35 = arith.addf %33, %34 : vector<16x192xf32>
    %36 = vector.shape_cast %35 : vector<16x192xf32> to vector<1x16x192xf32>
    %37 = arith.index_cast %c2_i32 : i32 to index
    %c0_28 = arith.constant 0 : index
    %c0_29 = arith.constant 0 : index
    %38 = vector.load %arg13[%37, %c0_28, %c0_29] : memref<8x16x192xf32, #tpu.memory_space<vmem>>, vector<1x16x192xf32>
    tpu.vector_store %arg13[%37, %c0_28, %c0_29], %36 {strides = array<i32>} : memref<8x16x192xf32, #tpu.memory_space<vmem>>, vector<1x16x192xf32>,
    %c3_i32 = arith.constant 3 : i32
    %39 = arith.index_cast %c3_i32 : i32 to index
    %c0_30 = arith.constant 0 : index
    %c0_31 = arith.constant 0 : index
    %c0_32 = arith.constant 0 : index
    %40 = vector.load %arg2[%39, %c0_30, %c0_31, %c0_32] : memref<8x2x8x3xbf16, #tpu.memory_space<vmem>>, vector<1x2x8x3xbf16>
    %41 = vector.shape_cast %40 : vector<1x2x8x3xbf16> to vector<2x8x3xbf16>
    %42 = vector.shape_cast %41 : vector<2x8x3xbf16> to vector<16x3xbf16>
    %c0_33 = arith.constant 0 : index
    %c0_34 = arith.constant 0 : index
    %43 = vector.load %arg3[%c0_33, %c0_34] : memref<3x192xbf16, #tpu.memory_space<vmem>>, vector<3x192xbf16>
    %cst_35 = arith.constant dense<0.000000e+00> : vector<16x192xf32>
    %44 = tpu.matmul %42, %43, %cst_35 {dimension_numbers = #tpu.dot_dimension_numbers<[1], [0], [0], [1], [0, 0, 1, 1], [], []>} : vector<16x3xbf16>, vector<3x192xbf16>, vector<16x192xf32> -> vector<16x192xf32>
    %45 = vector.broadcast %4 : vector<1x192xf32> to vector<16x192xf32>
    %46 = arith.addf %44, %45 : vector<16x192xf32>
    %47 = vector.shape_cast %46 : vector<16x192xf32> to vector<1x16x192xf32>
    %48 = arith.index_cast %c3_i32 : i32 to index
    %c0_36 = arith.constant 0 : index
    %c0_37 = arith.constant 0 : index
    %49 = vector.load %arg13[%48, %c0_36, %c0_37] : memref<8x16x192xf32, #tpu.memory_space<vmem>>, vector<1x16x192xf32>
    tpu.vector_store %arg13[%48, %c0_36, %c0_37], %47 {strides = array<i32>} : memref<8x16x192xf32, #tpu.memory_space<vmem>>, vector<1x16x192xf32>,
    %c4_i32 = arith.constant 4 : i32
    %50 = arith.index_cast %c4_i32 : i32 to index
    %c0_38 = arith.constant 0 : index
    %c0_39 = arith.constant 0 : index
    %c0_40 = arith.constant 0 : index
    %51 = vector.load %arg2[%50, %c0_38, %c0_39, %c0_40] : memref<8x2x8x3xbf16, #tpu.memory_space<vmem>>, vector<1x2x8x3xbf16>
    %52 = vector.shape_cast %51 : vector<1x2x8x3xbf16> to vector<2x8x3xbf16>
    %53 = vector.shape_cast %52 : vector<2x8x3xbf16> to vector<16x3xbf16>
    %c0_41 = arith.constant 0 : index
    %c0_42 = arith.constant 0 : index
    %54 = vector.load %arg3[%c0_41, %c0_42] : memref<3x192xbf16, #tpu.memory_space<vmem>>, vector<3x192xbf16>
    %cst_43 = arith.constant dense<0.000000e+00> : vector<16x192xf32>
    %55 = tpu.matmul %53, %54, %cst_43 {dimension_numbers = #tpu.dot_dimension_numbers<[1], [0], [0], [1], [0, 0, 1, 1], [], []>} : vector<16x3xbf16>, vector<3x192xbf16>, vector<16x192xf32> -> vector<16x192xf32>
    %56 = vector.broadcast %4 : vector<1x192xf32> to vector<16x192xf32>
    %57 = arith.addf %55, %56 : vector<16x192xf32>
    %58 = vector.shape_cast %57 : vector<16x192xf32> to vector<1x16x192xf32>
    %59 = arith.index_cast %c4_i32 : i32 to index
    %c0_44 = arith.constant 0 : index
    %c0_45 = arith.constant 0 : index
    %60 = vector.load %arg13[%59, %c0_44, %c0_45] : memref<8x16x192xf32, #tpu.memory_space<vmem>>, vector<1x16x192xf32>
    tpu.vector_store %arg13[%59, %c0_44, %c0_45], %58 {strides = array<i32>} : memref<8x16x192xf32, #tpu.memory_space<vmem>>, vector<1x16x192xf32>,
    %c5_i32 = arith.constant 5 : i32
    %61 = arith.index_cast %c5_i32 : i32 to index
    %c0_46 = arith.constant 0 : index
    %c0_47 = arith.constant 0 : index
    %c0_48 = arith.constant 0 : index
    %62 = vector.load %arg2[%61, %c0_46, %c0_47, %c0_48] : memref<8x2x8x3xbf16, #tpu.memory_space<vmem>>, vector<1x2x8x3xbf16>
    %63 = vector.shape_cast %62 : vector<1x2x8x3xbf16> to vector<2x8x3xbf16>
    %64 = vector.shape_cast %63 : vector<2x8x3xbf16> to vector<16x3xbf16>
    %c0_49 = arith.constant 0 : index
    %c0_50 = arith.constant 0 : index
    %65 = vector.load %arg3[%c0_49, %c0_50] : memref<3x192xbf16, #tpu.memory_space<vmem>>, vector<3x192xbf16>
    %cst_51 = arith.constant dense<0.000000e+00> : vector<16x192xf32>
    %66 = tpu.matmul %64, %65, %cst_51 {dimension_numbers = #tpu.dot_dimension_numbers<[1], [0], [0], [1], [0, 0, 1, 1], [], []>} : vector<16x3xbf16>, vector<3x192xbf16>, vector<16x192xf32> -> vector<16x192xf32>
    %67 = vector.broadcast %4 : vector<1x192xf32> to vector<16x192xf32>
    %68 = arith.addf %66, %67 : vector<16x192xf32>
    %69 = vector.shape_cast %68 : vector<16x192xf32> to vector<1x16x192xf32>
    %70 = arith.index_cast %c5_i32 : i32 to index
    %c0_52 = arith.constant 0 : index
    %c0_53 = arith.constant 0 : index
    %71 = vector.load %arg13[%70, %c0_52, %c0_53] : memref<8x16x192xf32, #tpu.memory_space<vmem>>, vector<1x16x192xf32>
    tpu.vector_store %arg13[%70, %c0_52, %c0_53], %69 {strides = array<i32>} : memref<8x16x192xf32, #tpu.memory_space<vmem>>, vector<1x16x192xf32>,
    %c6_i32 = arith.constant 6 : i32
    %72 = arith.index_cast %c6_i32 : i32 to index
    %c0_54 = arith.constant 0 : index
    %c0_55 = arith.constant 0 : index
    %c0_56 = arith.constant 0 : index
    %73 = vector.load %arg2[%72, %c0_54, %c0_55, %c0_56] : memref<8x2x8x3xbf16, #tpu.memory_space<vmem>>, vector<1x2x8x3xbf16>
    %74 = vector.shape_cast %73 : vector<1x2x8x3xbf16> to vector<2x8x3xbf16>
    %75 = vector.shape_cast %74 : vector<2x8x3xbf16> to vector<16x3xbf16>
    %c0_57 = arith.constant 0 : index
    %c0_58 = arith.constant 0 : index
    %76 = vector.load %arg3[%c0_57, %c0_58] : memref<3x192xbf16, #tpu.memory_space<vmem>>, vector<3x192xbf16>
    %cst_59 = arith.constant dense<0.000000e+00> : vector<16x192xf32>
    %77 = tpu.matmul %75, %76, %cst_59 {dimension_numbers = #tpu.dot_dimension_numbers<[1], [0], [0], [1], [0, 0, 1, 1], [], []>} : vector<16x3xbf16>, vector<3x192xbf16>, vector<16x192xf32> -> vector<16x192xf32>
    %78 = vector.broadcast %4 : vector<1x192xf32> to vector<16x192xf32>
    %79 = arith.addf %77, %78 : vector<16x192xf32>
    %80 = vector.shape_cast %79 : vector<16x192xf32> to vector<1x16x192xf32>
    %81 = arith.index_cast %c6_i32 : i32 to index
    %c0_60 = arith.constant 0 : index
    %c0_61 = arith.constant 0 : index
    %82 = vector.load %arg13[%81, %c0_60, %c0_61] : memref<8x16x192xf32, #tpu.memory_space<vmem>>, vector<1x16x192xf32>
    tpu.vector_store %arg13[%81, %c0_60, %c0_61], %80 {strides = array<i32>} : memref<8x16x192xf32, #tpu.memory_space<vmem>>, vector<1x16x192xf32>,
    %c7_i32 = arith.constant 7 : i32
    %83 = arith.index_cast %c7_i32 : i32 to index
    %c0_62 = arith.constant 0 : index
    %c0_63 = arith.constant 0 : index
    %c0_64 = arith.constant 0 : index
    %84 = vector.load %arg2[%83, %c0_62, %c0_63, %c0_64] : memref<8x2x8x3xbf16, #tpu.memory_space<vmem>>, vector<1x2x8x3xbf16>
    %85 = vector.shape_cast %84 : vector<1x2x8x3xbf16> to vector<2x8x3xbf16>
    %86 = vector.shape_cast %85 : vector<2x8x3xbf16> to vector<16x3xbf16>
    %c0_65 = arith.constant 0 : index
    %c0_66 = arith.constant 0 : index
    %87 = vector.load %arg3[%c0_65, %c0_66] : memref<3x192xbf16, #tpu.memory_space<vmem>>, vector<3x192xbf16>
    %cst_67 = arith.constant dense<0.000000e+00> : vector<16x192xf32>
    %88 = tpu.matmul %86, %87, %cst_67 {dimension_numbers = #tpu.dot_dimension_numbers<[1], [0], [0], [1], [0, 0, 1, 1], [], []>} : vector<16x3xbf16>, vector<3x192xbf16>, vector<16x192xf32> -> vector<16x192xf32>
    %89 = vector.broadcast %4 : vector<1x192xf32> to vector<16x192xf32>
    %90 = arith.addf %88, %89 : vector<16x192xf32>
    %91 = vector.shape_cast %90 : vector<16x192xf32> to vector<1x16x192xf32>
    %92 = arith.index_cast %c7_i32 : i32 to index
    %c0_68 = arith.constant 0 : index
    %c0_69 = arith.constant 0 : index
    %93 = vector.load %arg13[%92, %c0_68, %c0_69] : memref<8x16x192xf32, #tpu.memory_space<vmem>>, vector<1x16x192xf32>
    tpu.vector_store %arg13[%92, %c0_68, %c0_69], %91 {strides = array<i32>} : memref<8x16x192xf32, #tpu.memory_space<vmem>>, vector<1x16x192xf32>,
    %c8_i32 = arith.constant 8 : i32
    %c0_i32_70 = arith.constant 0 : i32
    %c0_71 = arith.constant 0 : index
    %c0_72 = arith.constant 0 : index
    %94 = vector.load %arg12[%c0_71, %c0_72] : memref<16x64xf32, #tpu.memory_space<vmem>>, vector<16x64xf32>
    %95 = arith.truncf %94 : vector<16x64xf32> to vector<16x64xbf16>
    %cst_73 = arith.constant dense<0.000000e+00> : vector<16x192xf32>
    %96 = tpu.matmul %95, %3, %cst_73 {dimension_numbers = #tpu.dot_dimension_numbers<[1], [0], [0], [1], [0, 0, 1, 1], [], []>} : vector<16x64xbf16>, vector<64x192xbf16>, vector<16x192xf32> -> vector<16x192xf32>
    %97 = arith.index_cast %c0_i32_70 : i32 to index
    %c0_74 = arith.constant 0 : index
    %c0_75 = arith.constant 0 : index
    %98 = vector.load %arg13[%97, %c0_74, %c0_75] : memref<8x16x192xf32, #tpu.memory_space<vmem>>, vector<1x16x192xf32>
    %99 = vector.shape_cast %98 : vector<1x16x192xf32> to vector<16x192xf32>
    %100 = vector.extract_strided_slice %99 {offsets = [0, 0], sizes = [16, 64], strides = [1, 1]} : vector<16x192xf32> to vector<16x64xf32>
    %101 = vector.extract_strided_slice %96 {offsets = [0, 0], sizes = [16, 64], strides = [1, 1]} : vector<16x192xf32> to vector<16x64xf32>
    %102 = arith.addf %100, %101 : vector<16x64xf32>
    %cst_76 = arith.constant 0.000000e+00 : f32
    %103 = vector.broadcast %cst_76 : f32 to vector<16x64xf32>
    %104 = arith.subf %103, %102 : vector<16x64xf32>
    %105 = math.exp %104 : vector<16x64xf32>
    %cst_77 = arith.constant 1.000000e+00 : f32
    %106 = vector.broadcast %cst_77 : f32 to vector<16x64xf32>
    %107 = arith.addf %106, %105 : vector<16x64xf32>
    %108 = tpu.reciprocal %107 {approx = true} : vector<16x64xf32> -> vector<16x64xf32>
    %109 = vector.extract_strided_slice %99 {offsets = [0, 64], sizes = [16, 64], strides = [1, 1]} : vector<16x192xf32> to vector<16x64xf32>
    %110 = vector.extract_strided_slice %96 {offsets = [0, 64], sizes = [16, 64], strides = [1, 1]} : vector<16x192xf32> to vector<16x64xf32>
    %111 = arith.addf %109, %110 : vector<16x64xf32>
    %cst_78 = arith.constant 0.000000e+00 : f32
    %112 = vector.broadcast %cst_78 : f32 to vector<16x64xf32>
    %113 = arith.subf %112, %111 : vector<16x64xf32>
    %114 = math.exp %113 : vector<16x64xf32>
    %cst_79 = arith.constant 1.000000e+00 : f32
    %115 = vector.broadcast %cst_79 : f32 to vector<16x64xf32>
    %116 = arith.addf %115, %114 : vector<16x64xf32>
    %117 = tpu.reciprocal %116 {approx = true} : vector<16x64xf32> -> vector<16x64xf32>
    %118 = vector.extract_strided_slice %99 {offsets = [0, 128], sizes = [16, 64], strides = [1, 1]} : vector<16x192xf32> to vector<16x64xf32>
    %119 = vector.extract_strided_slice %96 {offsets = [0, 128], sizes = [16, 64], strides = [1, 1]} : vector<16x192xf32> to vector<16x64xf32>
    %120 = vector.broadcast %5 : vector<1x64xf32> to vector<16x64xf32>
    %121 = arith.addf %119, %120 : vector<16x64xf32>
    %122 = arith.mulf %108, %121 : vector<16x64xf32>
    %123 = arith.addf %118, %122 : vector<16x64xf32>
    %124 = math.tanh %123 : vector<16x64xf32>
    %cst_80 = arith.constant 1.000000e+00 : f32
    %125 = vector.broadcast %cst_80 : f32 to vector<16x64xf32>
    %126 = arith.subf %125, %117 : vector<16x64xf32>
    %127 = arith.mulf %126, %124 : vector<16x64xf32>
    %128 = arith.mulf %117, %94 : vector<16x64xf32>
    %129 = arith.addf %127, %128 : vector<16x64xf32>
    %c0_81 = arith.constant 0 : index
    %c0_82 = arith.constant 0 : index
    %130 = vector.load %arg12[%c0_81, %c0_82] : memref<16x64xf32, #tpu.memory_space<vmem>>, vector<16x64xf32>
    tpu.vector_store %arg12[%c0_81, %c0_82], %129 {strides = array<i32>} : memref<16x64xf32, #tpu.memory_space<vmem>>, vector<16x64xf32>,
    %c1_i32_83 = arith.constant 1 : i32
    %c0_84 = arith.constant 0 : index
    %c0_85 = arith.constant 0 : index
    %131 = vector.load %arg12[%c0_84, %c0_85] : memref<16x64xf32, #tpu.memory_space<vmem>>, vector<16x64xf32>
    %132 = arith.truncf %131 : vector<16x64xf32> to vector<16x64xbf16>
    %cst_86 = arith.constant dense<0.000000e+00> : vector<16x192xf32>
    %133 = tpu.matmul %132, %3, %cst_86 {dimension_numbers = #tpu.dot_dimension_numbers<[1], [0], [0], [1], [0, 0, 1, 1], [], []>} : vector<16x64xbf16>, vector<64x192xbf16>, vector<16x192xf32> -> vector<16x192xf32>
    %134 = arith.index_cast %c1_i32_83 : i32 to index
    %c0_87 = arith.constant 0 : index
    %c0_88 = arith.constant 0 : index
    %135 = vector.load %arg13[%134, %c0_87, %c0_88] : memref<8x16x192xf32, #tpu.memory_space<vmem>>, vector<1x16x192xf32>
    %136 = vector.shape_cast %135 : vector<1x16x192xf32> to vector<16x192xf32>
    %137 = vector.extract_strided_slice %136 {offsets = [0, 0], sizes = [16, 64], strides = [1, 1]} : vector<16x192xf32> to vector<16x64xf32>
    %138 = vector.extract_strided_slice %133 {offsets = [0, 0], sizes = [16, 64], strides = [1, 1]} : vector<16x192xf32> to vector<16x64xf32>
    %139 = arith.addf %137, %138 : vector<16x64xf32>
    %cst_89 = arith.constant 0.000000e+00 : f32
    %140 = vector.broadcast %cst_89 : f32 to vector<16x64xf32>
    %141 = arith.subf %140, %139 : vector<16x64xf32>
    %142 = math.exp %141 : vector<16x64xf32>
    %cst_90 = arith.constant 1.000000e+00 : f32
    %143 = vector.broadcast %cst_90 : f32 to vector<16x64xf32>
    %144 = arith.addf %143, %142 : vector<16x64xf32>
    %145 = tpu.reciprocal %144 {approx = true} : vector<16x64xf32> -> vector<16x64xf32>
    %146 = vector.extract_strided_slice %136 {offsets = [0, 64], sizes = [16, 64], strides = [1, 1]} : vector<16x192xf32> to vector<16x64xf32>
    %147 = vector.extract_strided_slice %133 {offsets = [0, 64], sizes = [16, 64], strides = [1, 1]} : vector<16x192xf32> to vector<16x64xf32>
    %148 = arith.addf %146, %147 : vector<16x64xf32>
    %cst_91 = arith.constant 0.000000e+00 : f32
    %149 = vector.broadcast %cst_91 : f32 to vector<16x64xf32>
    %150 = arith.subf %149, %148 : vector<16x64xf32>
    %151 = math.exp %150 : vector<16x64xf32>
    %cst_92 = arith.constant 1.000000e+00 : f32
    %152 = vector.broadcast %cst_92 : f32 to vector<16x64xf32>
    %153 = arith.addf %152, %151 : vector<16x64xf32>
    %154 = tpu.reciprocal %153 {approx = true} : vector<16x64xf32> -> vector<16x64xf32>
    %155 = vector.extract_strided_slice %136 {offsets = [0, 128], sizes = [16, 64], strides = [1, 1]} : vector<16x192xf32> to vector<16x64xf32>
    %156 = vector.extract_strided_slice %133 {offsets = [0, 128], sizes = [16, 64], strides = [1, 1]} : vector<16x192xf32> to vector<16x64xf32>
    %157 = vector.broadcast %5 : vector<1x64xf32> to vector<16x64xf32>
    %158 = arith.addf %156, %157 : vector<16x64xf32>
    %159 = arith.mulf %145, %158 : vector<16x64xf32>
    %160 = arith.addf %155, %159 : vector<16x64xf32>
    %161 = math.tanh %160 : vector<16x64xf32>
    %cst_93 = arith.constant 1.000000e+00 : f32
    %162 = vector.broadcast %cst_93 : f32 to vector<16x64xf32>
    %163 = arith.subf %162, %154 : vector<16x64xf32>
    %164 = arith.mulf %163, %161 : vector<16x64xf32>
    %165 = arith.mulf %154, %131 : vector<16x64xf32>
    %166 = arith.addf %164, %165 : vector<16x64xf32>
    %c0_94 = arith.constant 0 : index
    %c0_95 = arith.constant 0 : index
    %167 = vector.load %arg12[%c0_94, %c0_95] : memref<16x64xf32, #tpu.memory_space<vmem>>, vector<16x64xf32>
    tpu.vector_store %arg12[%c0_94, %c0_95], %166 {strides = array<i32>} : memref<16x64xf32, #tpu.memory_space<vmem>>, vector<16x64xf32>,
    %c2_i32_96 = arith.constant 2 : i32
    %c0_97 = arith.constant 0 : index
    %c0_98 = arith.constant 0 : index
    %168 = vector.load %arg12[%c0_97, %c0_98] : memref<16x64xf32, #tpu.memory_space<vmem>>, vector<16x64xf32>
    %169 = arith.truncf %168 : vector<16x64xf32> to vector<16x64xbf16>
    %cst_99 = arith.constant dense<0.000000e+00> : vector<16x192xf32>
    %170 = tpu.matmul %169, %3, %cst_99 {dimension_numbers = #tpu.dot_dimension_numbers<[1], [0], [0], [1], [0, 0, 1, 1], [], []>} : vector<16x64xbf16>, vector<64x192xbf16>, vector<16x192xf32> -> vector<16x192xf32>
    %171 = arith.index_cast %c2_i32_96 : i32 to index
    %c0_100 = arith.constant 0 : index
    %c0_101 = arith.constant 0 : index
    %172 = vector.load %arg13[%171, %c0_100, %c0_101] : memref<8x16x192xf32, #tpu.memory_space<vmem>>, vector<1x16x192xf32>
    %173 = vector.shape_cast %172 : vector<1x16x192xf32> to vector<16x192xf32>
    %174 = vector.extract_strided_slice %173 {offsets = [0, 0], sizes = [16, 64], strides = [1, 1]} : vector<16x192xf32> to vector<16x64xf32>
    %175 = vector.extract_strided_slice %170 {offsets = [0, 0], sizes = [16, 64], strides = [1, 1]} : vector<16x192xf32> to vector<16x64xf32>
    %176 = arith.addf %174, %175 : vector<16x64xf32>
    %cst_102 = arith.constant 0.000000e+00 : f32
    %177 = vector.broadcast %cst_102 : f32 to vector<16x64xf32>
    %178 = arith.subf %177, %176 : vector<16x64xf32>
    %179 = math.exp %178 : vector<16x64xf32>
    %cst_103 = arith.constant 1.000000e+00 : f32
    %180 = vector.broadcast %cst_103 : f32 to vector<16x64xf32>
    %181 = arith.addf %180, %179 : vector<16x64xf32>
    %182 = tpu.reciprocal %181 {approx = true} : vector<16x64xf32> -> vector<16x64xf32>
    %183 = vector.extract_strided_slice %173 {offsets = [0, 64], sizes = [16, 64], strides = [1, 1]} : vector<16x192xf32> to vector<16x64xf32>
    %184 = vector.extract_strided_slice %170 {offsets = [0, 64], sizes = [16, 64], strides = [1, 1]} : vector<16x192xf32> to vector<16x64xf32>
    %185 = arith.addf %183, %184 : vector<16x64xf32>
    %cst_104 = arith.constant 0.000000e+00 : f32
    %186 = vector.broadcast %cst_104 : f32 to vector<16x64xf32>
    %187 = arith.subf %186, %185 : vector<16x64xf32>
    %188 = math.exp %187 : vector<16x64xf32>
    %cst_105 = arith.constant 1.000000e+00 : f32
    %189 = vector.broadcast %cst_105 : f32 to vector<16x64xf32>
    %190 = arith.addf %189, %188 : vector<16x64xf32>
    %191 = tpu.reciprocal %190 {approx = true} : vector<16x64xf32> -> vector<16x64xf32>
    %192 = vector.extract_strided_slice %173 {offsets = [0, 128], sizes = [16, 64], strides = [1, 1]} : vector<16x192xf32> to vector<16x64xf32>
    %193 = vector.extract_strided_slice %170 {offsets = [0, 128], sizes = [16, 64], strides = [1, 1]} : vector<16x192xf32> to vector<16x64xf32>
    %194 = vector.broadcast %5 : vector<1x64xf32> to vector<16x64xf32>
    %195 = arith.addf %193, %194 : vector<16x64xf32>
    %196 = arith.mulf %182, %195 : vector<16x64xf32>
    %197 = arith.addf %192, %196 : vector<16x64xf32>
    %198 = math.tanh %197 : vector<16x64xf32>
    %cst_106 = arith.constant 1.000000e+00 : f32
    %199 = vector.broadcast %cst_106 : f32 to vector<16x64xf32>
    %200 = arith.subf %199, %191 : vector<16x64xf32>
    %201 = arith.mulf %200, %198 : vector<16x64xf32>
    %202 = arith.mulf %191, %168 : vector<16x64xf32>
    %203 = arith.addf %201, %202 : vector<16x64xf32>
    %c0_107 = arith.constant 0 : index
    %c0_108 = arith.constant 0 : index
    %204 = vector.load %arg12[%c0_107, %c0_108] : memref<16x64xf32, #tpu.memory_space<vmem>>, vector<16x64xf32>
    tpu.vector_store %arg12[%c0_107, %c0_108], %203 {strides = array<i32>} : memref<16x64xf32, #tpu.memory_space<vmem>>, vector<16x64xf32>,
    %c3_i32_109 = arith.constant 3 : i32
    %c0_110 = arith.constant 0 : index
    %c0_111 = arith.constant 0 : index
    %205 = vector.load %arg12[%c0_110, %c0_111] : memref<16x64xf32, #tpu.memory_space<vmem>>, vector<16x64xf32>
    %206 = arith.truncf %205 : vector<16x64xf32> to vector<16x64xbf16>
    %cst_112 = arith.constant dense<0.000000e+00> : vector<16x192xf32>
    %207 = tpu.matmul %206, %3, %cst_112 {dimension_numbers = #tpu.dot_dimension_numbers<[1], [0], [0], [1], [0, 0, 1, 1], [], []>} : vector<16x64xbf16>, vector<64x192xbf16>, vector<16x192xf32> -> vector<16x192xf32>
    %208 = arith.index_cast %c3_i32_109 : i32 to index
    %c0_113 = arith.constant 0 : index
    %c0_114 = arith.constant 0 : index
    %209 = vector.load %arg13[%208, %c0_113, %c0_114] : memref<8x16x192xf32, #tpu.memory_space<vmem>>, vector<1x16x192xf32>
    %210 = vector.shape_cast %209 : vector<1x16x192xf32> to vector<16x192xf32>
    %211 = vector.extract_strided_slice %210 {offsets = [0, 0], sizes = [16, 64], strides = [1, 1]} : vector<16x192xf32> to vector<16x64xf32>
    %212 = vector.extract_strided_slice %207 {offsets = [0, 0], sizes = [16, 64], strides = [1, 1]} : vector<16x192xf32> to vector<16x64xf32>
    %213 = arith.addf %211, %212 : vector<16x64xf32>
    %cst_115 = arith.constant 0.000000e+00 : f32
    %214 = vector.broadcast %cst_115 : f32 to vector<16x64xf32>
    %215 = arith.subf %214, %213 : vector<16x64xf32>
    %216 = math.exp %215 : vector<16x64xf32>
    %cst_116 = arith.constant 1.000000e+00 : f32
    %217 = vector.broadcast %cst_116 : f32 to vector<16x64xf32>
    %218 = arith.addf %217, %216 : vector<16x64xf32>
    %219 = tpu.reciprocal %218 {approx = true} : vector<16x64xf32> -> vector<16x64xf32>
    %220 = vector.extract_strided_slice %210 {offsets = [0, 64], sizes = [16, 64], strides = [1, 1]} : vector<16x192xf32> to vector<16x64xf32>
    %221 = vector.extract_strided_slice %207 {offsets = [0, 64], sizes = [16, 64], strides = [1, 1]} : vector<16x192xf32> to vector<16x64xf32>
    %222 = arith.addf %220, %221 : vector<16x64xf32>
    %cst_117 = arith.constant 0.000000e+00 : f32
    %223 = vector.broadcast %cst_117 : f32 to vector<16x64xf32>
    %224 = arith.subf %223, %222 : vector<16x64xf32>
    %225 = math.exp %224 : vector<16x64xf32>
    %cst_118 = arith.constant 1.000000e+00 : f32
    %226 = vector.broadcast %cst_118 : f32 to vector<16x64xf32>
    %227 = arith.addf %226, %225 : vector<16x64xf32>
    %228 = tpu.reciprocal %227 {approx = true} : vector<16x64xf32> -> vector<16x64xf32>
    %229 = vector.extract_strided_slice %210 {offsets = [0, 128], sizes = [16, 64], strides = [1, 1]} : vector<16x192xf32> to vector<16x64xf32>
    %230 = vector.extract_strided_slice %207 {offsets = [0, 128], sizes = [16, 64], strides = [1, 1]} : vector<16x192xf32> to vector<16x64xf32>
    %231 = vector.broadcast %5 : vector<1x64xf32> to vector<16x64xf32>
    %232 = arith.addf %230, %231 : vector<16x64xf32>
    %233 = arith.mulf %219, %232 : vector<16x64xf32>
    %234 = arith.addf %229, %233 : vector<16x64xf32>
    %235 = math.tanh %234 : vector<16x64xf32>
    %cst_119 = arith.constant 1.000000e+00 : f32
    %236 = vector.broadcast %cst_119 : f32 to vector<16x64xf32>
    %237 = arith.subf %236, %228 : vector<16x64xf32>
    %238 = arith.mulf %237, %235 : vector<16x64xf32>
    %239 = arith.mulf %228, %205 : vector<16x64xf32>
    %240 = arith.addf %238, %239 : vector<16x64xf32>
    %c0_120 = arith.constant 0 : index
    %c0_121 = arith.constant 0 : index
    %241 = vector.load %arg12[%c0_120, %c0_121] : memref<16x64xf32, #tpu.memory_space<vmem>>, vector<16x64xf32>
    tpu.vector_store %arg12[%c0_120, %c0_121], %240 {strides = array<i32>} : memref<16x64xf32, #tpu.memory_space<vmem>>, vector<16x64xf32>,
    %c4_i32_122 = arith.constant 4 : i32
    %c0_123 = arith.constant 0 : index
    %c0_124 = arith.constant 0 : index
    %242 = vector.load %arg12[%c0_123, %c0_124] : memref<16x64xf32, #tpu.memory_space<vmem>>, vector<16x64xf32>
    %243 = arith.truncf %242 : vector<16x64xf32> to vector<16x64xbf16>
    %cst_125 = arith.constant dense<0.000000e+00> : vector<16x192xf32>
    %244 = tpu.matmul %243, %3, %cst_125 {dimension_numbers = #tpu.dot_dimension_numbers<[1], [0], [0], [1], [0, 0, 1, 1], [], []>} : vector<16x64xbf16>, vector<64x192xbf16>, vector<16x192xf32> -> vector<16x192xf32>
    %245 = arith.index_cast %c4_i32_122 : i32 to index
    %c0_126 = arith.constant 0 : index
    %c0_127 = arith.constant 0 : index
    %246 = vector.load %arg13[%245, %c0_126, %c0_127] : memref<8x16x192xf32, #tpu.memory_space<vmem>>, vector<1x16x192xf32>
    %247 = vector.shape_cast %246 : vector<1x16x192xf32> to vector<16x192xf32>
    %248 = vector.extract_strided_slice %247 {offsets = [0, 0], sizes = [16, 64], strides = [1, 1]} : vector<16x192xf32> to vector<16x64xf32>
    %249 = vector.extract_strided_slice %244 {offsets = [0, 0], sizes = [16, 64], strides = [1, 1]} : vector<16x192xf32> to vector<16x64xf32>
    %250 = arith.addf %248, %249 : vector<16x64xf32>
    %cst_128 = arith.constant 0.000000e+00 : f32
    %251 = vector.broadcast %cst_128 : f32 to vector<16x64xf32>
    %252 = arith.subf %251, %250 : vector<16x64xf32>
    %253 = math.exp %252 : vector<16x64xf32>
    %cst_129 = arith.constant 1.000000e+00 : f32
    %254 = vector.broadcast %cst_129 : f32 to vector<16x64xf32>
    %255 = arith.addf %254, %253 : vector<16x64xf32>
    %256 = tpu.reciprocal %255 {approx = true} : vector<16x64xf32> -> vector<16x64xf32>
    %257 = vector.extract_strided_slice %247 {offsets = [0, 64], sizes = [16, 64], strides = [1, 1]} : vector<16x192xf32> to vector<16x64xf32>
    %258 = vector.extract_strided_slice %244 {offsets = [0, 64], sizes = [16, 64], strides = [1, 1]} : vector<16x192xf32> to vector<16x64xf32>
    %259 = arith.addf %257, %258 : vector<16x64xf32>
    %cst_130 = arith.constant 0.000000e+00 : f32
    %260 = vector.broadcast %cst_130 : f32 to vector<16x64xf32>
    %261 = arith.subf %260, %259 : vector<16x64xf32>
    %262 = math.exp %261 : vector<16x64xf32>
    %cst_131 = arith.constant 1.000000e+00 : f32
    %263 = vector.broadcast %cst_131 : f32 to vector<16x64xf32>
    %264 = arith.addf %263, %262 : vector<16x64xf32>
    %265 = tpu.reciprocal %264 {approx = true} : vector<16x64xf32> -> vector<16x64xf32>
    %266 = vector.extract_strided_slice %247 {offsets = [0, 128], sizes = [16, 64], strides = [1, 1]} : vector<16x192xf32> to vector<16x64xf32>
    %267 = vector.extract_strided_slice %244 {offsets = [0, 128], sizes = [16, 64], strides = [1, 1]} : vector<16x192xf32> to vector<16x64xf32>
    %268 = vector.broadcast %5 : vector<1x64xf32> to vector<16x64xf32>
    %269 = arith.addf %267, %268 : vector<16x64xf32>
    %270 = arith.mulf %256, %269 : vector<16x64xf32>
    %271 = arith.addf %266, %270 : vector<16x64xf32>
    %272 = math.tanh %271 : vector<16x64xf32>
    %cst_132 = arith.constant 1.000000e+00 : f32
    %273 = vector.broadcast %cst_132 : f32 to vector<16x64xf32>
    %274 = arith.subf %273, %265 : vector<16x64xf32>
    %275 = arith.mulf %274, %272 : vector<16x64xf32>
    %276 = arith.mulf %265, %242 : vector<16x64xf32>
    %277 = arith.addf %275, %276 : vector<16x64xf32>
    %c0_133 = arith.constant 0 : index
    %c0_134 = arith.constant 0 : index
    %278 = vector.load %arg12[%c0_133, %c0_134] : memref<16x64xf32, #tpu.memory_space<vmem>>, vector<16x64xf32>
    tpu.vector_store %arg12[%c0_133, %c0_134], %277 {strides = array<i32>} : memref<16x64xf32, #tpu.memory_space<vmem>>, vector<16x64xf32>,
    %c5_i32_135 = arith.constant 5 : i32
    %c0_136 = arith.constant 0 : index
    %c0_137 = arith.constant 0 : index
    %279 = vector.load %arg12[%c0_136, %c0_137] : memref<16x64xf32, #tpu.memory_space<vmem>>, vector<16x64xf32>
    %280 = arith.truncf %279 : vector<16x64xf32> to vector<16x64xbf16>
    %cst_138 = arith.constant dense<0.000000e+00> : vector<16x192xf32>
    %281 = tpu.matmul %280, %3, %cst_138 {dimension_numbers = #tpu.dot_dimension_numbers<[1], [0], [0], [1], [0, 0, 1, 1], [], []>} : vector<16x64xbf16>, vector<64x192xbf16>, vector<16x192xf32> -> vector<16x192xf32>
    %282 = arith.index_cast %c5_i32_135 : i32 to index
    %c0_139 = arith.constant 0 : index
    %c0_140 = arith.constant 0 : index
    %283 = vector.load %arg13[%282, %c0_139, %c0_140] : memref<8x16x192xf32, #tpu.memory_space<vmem>>, vector<1x16x192xf32>
    %284 = vector.shape_cast %283 : vector<1x16x192xf32> to vector<16x192xf32>
    %285 = vector.extract_strided_slice %284 {offsets = [0, 0], sizes = [16, 64], strides = [1, 1]} : vector<16x192xf32> to vector<16x64xf32>
    %286 = vector.extract_strided_slice %281 {offsets = [0, 0], sizes = [16, 64], strides = [1, 1]} : vector<16x192xf32> to vector<16x64xf32>
    %287 = arith.addf %285, %286 : vector<16x64xf32>
    %cst_141 = arith.constant 0.000000e+00 : f32
    %288 = vector.broadcast %cst_141 : f32 to vector<16x64xf32>
    %289 = arith.subf %288, %287 : vector<16x64xf32>
    %290 = math.exp %289 : vector<16x64xf32>
    %cst_142 = arith.constant 1.000000e+00 : f32
    %291 = vector.broadcast %cst_142 : f32 to vector<16x64xf32>
    %292 = arith.addf %291, %290 : vector<16x64xf32>
    %293 = tpu.reciprocal %292 {approx = true} : vector<16x64xf32> -> vector<16x64xf32>
    %294 = vector.extract_strided_slice %284 {offsets = [0, 64], sizes = [16, 64], strides = [1, 1]} : vector<16x192xf32> to vector<16x64xf32>
    %295 = vector.extract_strided_slice %281 {offsets = [0, 64], sizes = [16, 64], strides = [1, 1]} : vector<16x192xf32> to vector<16x64xf32>
    %296 = arith.addf %294, %295 : vector<16x64xf32>
    %cst_143 = arith.constant 0.000000e+00 : f32
    %297 = vector.broadcast %cst_143 : f32 to vector<16x64xf32>
    %298 = arith.subf %297, %296 : vector<16x64xf32>
    %299 = math.exp %298 : vector<16x64xf32>
    %cst_144 = arith.constant 1.000000e+00 : f32
    %300 = vector.broadcast %cst_144 : f32 to vector<16x64xf32>
    %301 = arith.addf %300, %299 : vector<16x64xf32>
    %302 = tpu.reciprocal %301 {approx = true} : vector<16x64xf32> -> vector<16x64xf32>
    %303 = vector.extract_strided_slice %284 {offsets = [0, 128], sizes = [16, 64], strides = [1, 1]} : vector<16x192xf32> to vector<16x64xf32>
    %304 = vector.extract_strided_slice %281 {offsets = [0, 128], sizes = [16, 64], strides = [1, 1]} : vector<16x192xf32> to vector<16x64xf32>
    %305 = vector.broadcast %5 : vector<1x64xf32> to vector<16x64xf32>
    %306 = arith.addf %304, %305 : vector<16x64xf32>
    %307 = arith.mulf %293, %306 : vector<16x64xf32>
    %308 = arith.addf %303, %307 : vector<16x64xf32>
    %309 = math.tanh %308 : vector<16x64xf32>
    %cst_145 = arith.constant 1.000000e+00 : f32
    %310 = vector.broadcast %cst_145 : f32 to vector<16x64xf32>
    %311 = arith.subf %310, %302 : vector<16x64xf32>
    %312 = arith.mulf %311, %309 : vector<16x64xf32>
    %313 = arith.mulf %302, %279 : vector<16x64xf32>
    %314 = arith.addf %312, %313 : vector<16x64xf32>
    %c0_146 = arith.constant 0 : index
    %c0_147 = arith.constant 0 : index
    %315 = vector.load %arg12[%c0_146, %c0_147] : memref<16x64xf32, #tpu.memory_space<vmem>>, vector<16x64xf32>
    tpu.vector_store %arg12[%c0_146, %c0_147], %314 {strides = array<i32>} : memref<16x64xf32, #tpu.memory_space<vmem>>, vector<16x64xf32>,
    %c6_i32_148 = arith.constant 6 : i32
    %c0_149 = arith.constant 0 : index
    %c0_150 = arith.constant 0 : index
    %316 = vector.load %arg12[%c0_149, %c0_150] : memref<16x64xf32, #tpu.memory_space<vmem>>, vector<16x64xf32>
    %317 = arith.truncf %316 : vector<16x64xf32> to vector<16x64xbf16>
    %cst_151 = arith.constant dense<0.000000e+00> : vector<16x192xf32>
    %318 = tpu.matmul %317, %3, %cst_151 {dimension_numbers = #tpu.dot_dimension_numbers<[1], [0], [0], [1], [0, 0, 1, 1], [], []>} : vector<16x64xbf16>, vector<64x192xbf16>, vector<16x192xf32> -> vector<16x192xf32>
    %319 = arith.index_cast %c6_i32_148 : i32 to index
    %c0_152 = arith.constant 0 : index
    %c0_153 = arith.constant 0 : index
    %320 = vector.load %arg13[%319, %c0_152, %c0_153] : memref<8x16x192xf32, #tpu.memory_space<vmem>>, vector<1x16x192xf32>
    %321 = vector.shape_cast %320 : vector<1x16x192xf32> to vector<16x192xf32>
    %322 = vector.extract_strided_slice %321 {offsets = [0, 0], sizes = [16, 64], strides = [1, 1]} : vector<16x192xf32> to vector<16x64xf32>
    %323 = vector.extract_strided_slice %318 {offsets = [0, 0], sizes = [16, 64], strides = [1, 1]} : vector<16x192xf32> to vector<16x64xf32>
    %324 = arith.addf %322, %323 : vector<16x64xf32>
    %cst_154 = arith.constant 0.000000e+00 : f32
    %325 = vector.broadcast %cst_154 : f32 to vector<16x64xf32>
    %326 = arith.subf %325, %324 : vector<16x64xf32>
    %327 = math.exp %326 : vector<16x64xf32>
    %cst_155 = arith.constant 1.000000e+00 : f32
    %328 = vector.broadcast %cst_155 : f32 to vector<16x64xf32>
    %329 = arith.addf %328, %327 : vector<16x64xf32>
    %330 = tpu.reciprocal %329 {approx = true} : vector<16x64xf32> -> vector<16x64xf32>
    %331 = vector.extract_strided_slice %321 {offsets = [0, 64], sizes = [16, 64], strides = [1, 1]} : vector<16x192xf32> to vector<16x64xf32>
    %332 = vector.extract_strided_slice %318 {offsets = [0, 64], sizes = [16, 64], strides = [1, 1]} : vector<16x192xf32> to vector<16x64xf32>
    %333 = arith.addf %331, %332 : vector<16x64xf32>
    %cst_156 = arith.constant 0.000000e+00 : f32
    %334 = vector.broadcast %cst_156 : f32 to vector<16x64xf32>
    %335 = arith.subf %334, %333 : vector<16x64xf32>
    %336 = math.exp %335 : vector<16x64xf32>
    %cst_157 = arith.constant 1.000000e+00 : f32
    %337 = vector.broadcast %cst_157 : f32 to vector<16x64xf32>
    %338 = arith.addf %337, %336 : vector<16x64xf32>
    %339 = tpu.reciprocal %338 {approx = true} : vector<16x64xf32> -> vector<16x64xf32>
    %340 = vector.extract_strided_slice %321 {offsets = [0, 128], sizes = [16, 64], strides = [1, 1]} : vector<16x192xf32> to vector<16x64xf32>
    %341 = vector.extract_strided_slice %318 {offsets = [0, 128], sizes = [16, 64], strides = [1, 1]} : vector<16x192xf32> to vector<16x64xf32>
    %342 = vector.broadcast %5 : vector<1x64xf32> to vector<16x64xf32>
    %343 = arith.addf %341, %342 : vector<16x64xf32>
    %344 = arith.mulf %330, %343 : vector<16x64xf32>
    %345 = arith.addf %340, %344 : vector<16x64xf32>
    %346 = math.tanh %345 : vector<16x64xf32>
    %cst_158 = arith.constant 1.000000e+00 : f32
    %347 = vector.broadcast %cst_158 : f32 to vector<16x64xf32>
    %348 = arith.subf %347, %339 : vector<16x64xf32>
    %349 = arith.mulf %348, %346 : vector<16x64xf32>
    %350 = arith.mulf %339, %316 : vector<16x64xf32>
    %351 = arith.addf %349, %350 : vector<16x64xf32>
    %c0_159 = arith.constant 0 : index
    %c0_160 = arith.constant 0 : index
    %352 = vector.load %arg12[%c0_159, %c0_160] : memref<16x64xf32, #tpu.memory_space<vmem>>, vector<16x64xf32>
    tpu.vector_store %arg12[%c0_159, %c0_160], %351 {strides = array<i32>} : memref<16x64xf32, #tpu.memory_space<vmem>>, vector<16x64xf32>,
    %c7_i32_161 = arith.constant 7 : i32
    %c0_162 = arith.constant 0 : index
    %c0_163 = arith.constant 0 : index
    %353 = vector.load %arg12[%c0_162, %c0_163] : memref<16x64xf32, #tpu.memory_space<vmem>>, vector<16x64xf32>
    %354 = arith.truncf %353 : vector<16x64xf32> to vector<16x64xbf16>
    %cst_164 = arith.constant dense<0.000000e+00> : vector<16x192xf32>
    %355 = tpu.matmul %354, %3, %cst_164 {dimension_numbers = #tpu.dot_dimension_numbers<[1], [0], [0], [1], [0, 0, 1, 1], [], []>} : vector<16x64xbf16>, vector<64x192xbf16>, vector<16x192xf32> -> vector<16x192xf32>
    %356 = arith.index_cast %c7_i32_161 : i32 to index
    %c0_165 = arith.constant 0 : index
    %c0_166 = arith.constant 0 : index
    %357 = vector.load %arg13[%356, %c0_165, %c0_166] : memref<8x16x192xf32, #tpu.memory_space<vmem>>, vector<1x16x192xf32>
    %358 = vector.shape_cast %357 : vector<1x16x192xf32> to vector<16x192xf32>
    %359 = vector.extract_strided_slice %358 {offsets = [0, 0], sizes = [16, 64], strides = [1, 1]} : vector<16x192xf32> to vector<16x64xf32>
    %360 = vector.extract_strided_slice %355 {offsets = [0, 0], sizes = [16, 64], strides = [1, 1]} : vector<16x192xf32> to vector<16x64xf32>
    %361 = arith.addf %359, %360 : vector<16x64xf32>
    %cst_167 = arith.constant 0.000000e+00 : f32
    %362 = vector.broadcast %cst_167 : f32 to vector<16x64xf32>
    %363 = arith.subf %362, %361 : vector<16x64xf32>
    %364 = math.exp %363 : vector<16x64xf32>
    %cst_168 = arith.constant 1.000000e+00 : f32
    %365 = vector.broadcast %cst_168 : f32 to vector<16x64xf32>
    %366 = arith.addf %365, %364 : vector<16x64xf32>
    %367 = tpu.reciprocal %366 {approx = true} : vector<16x64xf32> -> vector<16x64xf32>
    %368 = vector.extract_strided_slice %358 {offsets = [0, 64], sizes = [16, 64], strides = [1, 1]} : vector<16x192xf32> to vector<16x64xf32>
    %369 = vector.extract_strided_slice %355 {offsets = [0, 64], sizes = [16, 64], strides = [1, 1]} : vector<16x192xf32> to vector<16x64xf32>
    %370 = arith.addf %368, %369 : vector<16x64xf32>
    %cst_169 = arith.constant 0.000000e+00 : f32
    %371 = vector.broadcast %cst_169 : f32 to vector<16x64xf32>
    %372 = arith.subf %371, %370 : vector<16x64xf32>
    %373 = math.exp %372 : vector<16x64xf32>
    %cst_170 = arith.constant 1.000000e+00 : f32
    %374 = vector.broadcast %cst_170 : f32 to vector<16x64xf32>
    %375 = arith.addf %374, %373 : vector<16x64xf32>
    %376 = tpu.reciprocal %375 {approx = true} : vector<16x64xf32> -> vector<16x64xf32>
    %377 = vector.extract_strided_slice %358 {offsets = [0, 128], sizes = [16, 64], strides = [1, 1]} : vector<16x192xf32> to vector<16x64xf32>
    %378 = vector.extract_strided_slice %355 {offsets = [0, 128], sizes = [16, 64], strides = [1, 1]} : vector<16x192xf32> to vector<16x64xf32>
    %379 = vector.broadcast %5 : vector<1x64xf32> to vector<16x64xf32>
    %380 = arith.addf %378, %379 : vector<16x64xf32>
    %381 = arith.mulf %367, %380 : vector<16x64xf32>
    %382 = arith.addf %377, %381 : vector<16x64xf32>
    %383 = math.tanh %382 : vector<16x64xf32>
    %cst_171 = arith.constant 1.000000e+00 : f32
    %384 = vector.broadcast %cst_171 : f32 to vector<16x64xf32>
    %385 = arith.subf %384, %376 : vector<16x64xf32>
    %386 = arith.mulf %385, %383 : vector<16x64xf32>
    %387 = arith.mulf %376, %353 : vector<16x64xf32>
    %388 = arith.addf %386, %387 : vector<16x64xf32>
    %c0_172 = arith.constant 0 : index
    %c0_173 = arith.constant 0 : index
    %389 = vector.load %arg12[%c0_172, %c0_173] : memref<16x64xf32, #tpu.memory_space<vmem>>, vector<16x64xf32>
    tpu.vector_store %arg12[%c0_172, %c0_173], %388 {strides = array<i32>} : memref<16x64xf32, #tpu.memory_space<vmem>>, vector<16x64xf32>,
    %c8_i32_174 = arith.constant 8 : i32
    %c0_i32_175 = arith.constant 0 : i32
    %390 = arith.cmpi eq, %arg1, %c0_i32_175 : i32
    %391 = arith.extui %390 : i1 to i32
    %c0_i32_176 = arith.constant 0 : i32
    %392 = arith.cmpi ne, %391, %c0_i32_176 : i32
    scf.if %392 {
      %c0_177 = arith.constant 0 : index
      %c0_178 = arith.constant 0 : index
      %393 = vector.load %arg12[%c0_177, %c0_178] : memref<16x64xf32, #tpu.memory_space<vmem>>, vector<16x64xf32>
      %394 = vector.extract_strided_slice %393 {offsets = [0, 0], sizes = [8, 64], strides = [1, 1]} : vector<16x64xf32> to vector<8x64xf32>
      %395 = vector.extract_strided_slice %393 {offsets = [8, 0], sizes = [8, 64], strides = [1, 1]} : vector<16x64xf32> to vector<8x64xf32>
      %396 = arith.subf %394, %395 : vector<8x64xf32>
      %397 = math.absf %396 : vector<8x64xf32>
      %c0_179 = arith.constant 0 : index
      %c0_180 = arith.constant 0 : index
      %398 = vector.load %arg7[%c0_179, %c0_180] : memref<64x32xf32, #tpu.memory_space<vmem>>, vector<64x32xf32>
      %cst_181 = arith.constant dense<0.000000e+00> : vector<8x32xf32>
      %399 = tpu.matmul %397, %398, %cst_181 {dimension_numbers = #tpu.dot_dimension_numbers<[1], [0], [0], [1], [0, 0, 1, 1], [], []>} : vector<8x64xf32>, vector<64x32xf32>, vector<8x32xf32> -> vector<8x32xf32>
      %c0_182 = arith.constant 0 : index
      %c0_183 = arith.constant 0 : index
      %400 = vector.load %arg8[%c0_182, %c0_183] : memref<1x32xf32, #tpu.memory_space<vmem>>, vector<1x32xf32>
      %401 = vector.broadcast %400 : vector<1x32xf32> to vector<8x32xf32>
      %402 = arith.addf %399, %401 : vector<8x32xf32>
      %cst_184 = arith.constant 0.000000e+00 : f32
      %403 = vector.broadcast %cst_184 : f32 to vector<8x32xf32>
      %404 = arith.maximumf %402, %403 : vector<8x32xf32>
      %c0_185 = arith.constant 0 : index
      %c0_186 = arith.constant 0 : index
      %405 = vector.load %arg9[%c0_185, %c0_186] : memref<1x32xf32, #tpu.memory_space<vmem>>, vector<1x32xf32>
      %406 = vector.broadcast %405 : vector<1x32xf32> to vector<8x32xf32>
      %407 = arith.mulf %404, %406 : vector<8x32xf32>
      %cst_187 = arith.constant dense<0.000000e+00> : vector<8xf32>
      %408 = vector.multi_reduction <add>, %407, %cst_187 [1] : vector<8x32xf32> to vector<8xf32>
      %409 = vector.shape_cast %408 : vector<8xf32> to vector<8x1xf32>
      %c0_188 = arith.constant 0 : index
      %c0_189 = arith.constant 0 : index
      %410 = vector.load %arg10[%c0_188, %c0_189] : memref<1x1xf32, #tpu.memory_space<vmem>>, vector<1x1xf32>
      %411 = vector.broadcast %410 : vector<1x1xf32> to vector<8x1xf32>
      %412 = arith.addf %409, %411 : vector<8x1xf32>
      %cst_190 = arith.constant 0.000000e+00 : f32
      %413 = vector.broadcast %cst_190 : f32 to vector<8x1xf32>
      %414 = arith.subf %413, %412 : vector<8x1xf32>
      %415 = math.exp %414 : vector<8x1xf32>
      %cst_191 = arith.constant 1.000000e+00 : f32
      %416 = vector.broadcast %cst_191 : f32 to vector<8x1xf32>
      %417 = arith.addf %416, %415 : vector<8x1xf32>
      %418 = tpu.reciprocal %417 {approx = true} : vector<8x1xf32> -> vector<8x1xf32>
      %c0_192 = arith.constant 0 : index
      %c0_193 = arith.constant 0 : index
      %419 = vector.load %arg11[%c0_192, %c0_193] : memref<8x1xf32, #tpu.memory_space<vmem>>, vector<8x1xf32>
      tpu.vector_store %arg11[%c0_192, %c0_193], %418 {strides = array<i32>} : memref<8x1xf32, #tpu.memory_space<vmem>>, vector<8x1xf32>,
    } else {
    }
    return
  }
  func.func @transform_0(%arg0: i32, %arg1: i32) -> (i32, i32, i32, i32) {
    %c0_i32 = arith.constant 0 : i32
    %c0_i32_0 = arith.constant 0 : i32
    %c0_i32_1 = arith.constant 0 : i32
    return %arg1, %c0_i32, %arg0, %c0_i32_0 : i32, i32, i32, i32
  }
  func.func @transform_1(%arg0: i32, %arg1: i32) -> (i32, i32) {
    %c0_i32 = arith.constant 0 : i32
    %c0_i32_0 = arith.constant 0 : i32
    %c0_i32_1 = arith.constant 0 : i32
    return %c0_i32, %c0_i32_0 : i32, i32
  }
  func.func @transform_2(%arg0: i32, %arg1: i32) -> (i32, i32) {
    %c0_i32 = arith.constant 0 : i32
    %c0_i32_0 = arith.constant 0 : i32
    %c0_i32_1 = arith.constant 0 : i32
    return %c0_i32, %c0_i32_0 : i32, i32
  }
  func.func @transform_3(%arg0: i32, %arg1: i32) -> (i32, i32) {
    %c0_i32 = arith.constant 0 : i32
    %c0_i32_0 = arith.constant 0 : i32
    %c0_i32_1 = arith.constant 0 : i32
    return %c0_i32, %c0_i32_0 : i32, i32
  }
  func.func @transform_4(%arg0: i32, %arg1: i32) -> (i32, i32) {
    %c0_i32 = arith.constant 0 : i32
    %c0_i32_0 = arith.constant 0 : i32
    %c0_i32_1 = arith.constant 0 : i32
    return %c0_i32, %c0_i32_0 : i32, i32
  }
  func.func @transform_5(%arg0: i32, %arg1: i32) -> (i32, i32) {
    %c0_i32 = arith.constant 0 : i32
    %c0_i32_0 = arith.constant 0 : i32
    %c0_i32_1 = arith.constant 0 : i32
    return %c0_i32, %c0_i32_0 : i32, i32
  }
  func.func @transform_6(%arg0: i32, %arg1: i32) -> (i32, i32) {
    %c0_i32 = arith.constant 0 : i32
    %c0_i32_0 = arith.constant 0 : i32
    %c0_i32_1 = arith.constant 0 : i32
    return %c0_i32, %c0_i32_0 : i32, i32
  }
  func.func @transform_7(%arg0: i32, %arg1: i32) -> (i32, i32) {
    %c0_i32 = arith.constant 0 : i32
    %c0_i32_0 = arith.constant 0 : i32
    %c0_i32_1 = arith.constant 0 : i32
    return %c0_i32, %c0_i32_0 : i32, i32
  }
  func.func @transform_8(%arg0: i32, %arg1: i32) -> (i32, i32) {
    %c0_i32 = arith.constant 0 : i32
    %c0_i32_0 = arith.constant 0 : i32
    %c0_i32_1 = arith.constant 0 : i32
    return %c0_i32, %c0_i32_0 : i32, i32
  }
  func.func @transform_9(%arg0: i32, %arg1: i32) -> (i32, i32) {
    %c0_i32 = arith.constant 0 : i32
    %c0_i32_0 = arith.constant 0 : i32
    return %arg0, %c0_i32 : i32, i32
  }
}

</mosaic_0001>

<bundles_post_ra>
// kernel: tpu_custom_call.1
= control target key start
LH: loop header
LB: loop body
LE: loop exit
PB: predicated region body
PF: predicated region fallthrough
CT: control target
= control target key end

     0   :  { %s3017_s0 = inlined_call_operand.vmem [shape: bf16[8,2,16,3], index: 0, kind: input, shape index: {}]   ;;  %s3018_s1 = inlined_call_operand.vmem [shape: bf16[3,192], index: 1, kind: input, shape index: {}]   ;;  %s3019_s2 = inlined_call_operand.vmem [shape: bf16[64,192], index: 2, kind: input, shape index: {}]   ;;  %s3020_s3 = inlined_call_operand.vmem [shape: f32[1,192], index: 3, kind: input, shape index: {}]   ;;  %s3021_s4 = inlined_call_operand.vmem [shape: f32[1,64], index: 4, kind: input, shape index: {}]   ;;  %s3022_s5 = inlined_call_operand.vmem [shape: f32[64,32], index: 5, kind: input, shape index: {}]   ;;  %s3023_s6 = inlined_call_operand.vmem [shape: f32[1,32], index: 6, kind: input, shape index: {}]   ;;  %s3024_s7 = inlined_call_operand.vmem [shape: f32[1,32], index: 7, kind: input, shape index: {}]   ;;  %s3025_s8 = inlined_call_operand.<no memory space> [shape: f32[1,1], index: 8, kind: input, shape index: {}]   ;;  %s3026_s9 = inlined_call_operand.vmem [shape: f32[16,1], index: 9, kind: output, shape index: {}]  }
   0x1   :  { %v14_v0 = vstv %s3025_s8 }
   0x2   :  { %15 = vst [vmem:[#allocation4] sm:$0x1] %v14_v0 }
   0x3   :  { %s2543_s11 = smov 0   ;;  %s2545_s12 = smov 0  }
   0x4   :  { %s2547_s13 = smov 0   ;;  %s2549_s14 = smov 0  }
   0x5   :  { %s2551_s15 = smov 0  }
   0x6 LB: > { %s33_s8 = sadd.s32 1, %s2479_s14  ;;  %p49_p1 = scmp.ne.s32.totalorder %s2471_s12, %s2467_s11  ;;  %s2483_s15 = sphi %s2551_s15, %s21_s15   ;;  %s2479_s14 = sphi %s2549_s14, %s3030_s14   ;;  %s2475_s13 = sphi %s2547_s13, %s3029_s13   ;;  %s2471_s12 = sphi %s2545_s12, %s3028_s12   ;;  %s2467_s11 = sphi %s2543_s11, %s3027_s11  }
   0x7   : > { %p35_p0 = scmp.ge.s32.totalorder %s33_s8, 2  ;;  %p50_p2 = scmp.eq.s32.totalorder %s2483_s15, 0 }
   0x8   : > { %s42_s17 = sadd.s32 1, %s2471_s12  ;;  %p2184_p5 = scmp.ge.s32.totalorder %s2483_s15, 2 }
   0x9   : > { %s3032_s8 = smov (%p35_p0, %s33_s8), 0  ;;  %p51_p3 = por %p50_p2, %p49_p1 }
   0xa   : > { %s38_s16 = ssub.s32 %s2479_s14, %s3032_s8  ;;  %293 = sbr.rel (%p2184_p5) target bundleno = 29 (0x1d), region = 48 }
   0xb   : > { %p40_p4 = scmp.eq.s32.totalorder %s38_s16, 0 }
   0xd   : > { %s2578_s18 = scalar_select %p40_p4, %s2471_s12, %s42_s17  }
   0xf   : > { %296 = sbr.rel (!%p51_p3) target bundleno = 29 (0x1d), region = 52  ;;  %s298_s19 = sand.u32 (%p51_p3), 1, %s2471_s12  }
  0x10   : > { %s2186_s20 = sshll.u32 (%p51_p3), %s2479_s14, 2  ;;  %s2185_s21 = sshll.u32 (%p51_p3), %s298_s19, 6 }
  0x11   : > { %s2586_s24 = scalar_lea.vmem (%p51_p3), %s3017_s0, %s2186_s20  ;;  %s300_s25 = scalar_lea.vmem (%p51_p3), [#allocation5], %s2185_s21 }
  0x12   : > { %v322_v1 = vld [vmem:[%s2586_s24] sm:$0xf] (%p51_p3)  ;;  %v324_v2 = vld [vmem:[%s2586_s24 + $0x8] sm:$0xf] (%p51_p3)  ;;  %v326_v3 = vld [vmem:[%s2586_s24 + $0x10] sm:$0xf] (%p51_p3) }
  0x13   : > { %323 = vst [vmem:[%s300_s25] sm:$0xf] (%p51_p3), %v322_v1  ;;  %325 = vst [vmem:[%s300_s25 + $0x4] sm:$0xf] (%p51_p3), %v324_v2  ;;  %v328_v4 = vld [vmem:[%s2586_s24 + $0x18] sm:$0xf] (%p51_p3) }
  0x14   : > { %v330_v5 = vld [vmem:[%s2586_s24 + $0x20] sm:$0xf]  ;;  %327 = vst [vmem:[%s300_s25 + $0x8] sm:$0xf] %v326_v3  ;;  %329 = vst [vmem:[%s300_s25 + $0xc] sm:$0xf] %v328_v4 }
  0x15   : > { %331 = vst [vmem:[%s300_s25 + $0x10] sm:$0xf] %v330_v5  ;;  %v332_v6 = vld [vmem:[%s2586_s24 + $0x28] sm:$0xf]  ;;  %v334_v7 = vld [vmem:[%s2586_s24 + $0x30] sm:$0xf] }
  0x16   : > { %v336_v8 = vld [vmem:[%s2586_s24 + $0x38] sm:$0xf]  ;;  %333 = vst [vmem:[%s300_s25 + $0x14] sm:$0xf] %v332_v6  ;;  %335 = vst [vmem:[%s300_s25 + $0x18] sm:$0xf] %v334_v7 }
  0x17   : > { %337 = vst [vmem:[%s300_s25 + $0x1c] sm:$0xf] %v336_v8  ;;  %v338_v9 = vld [vmem:[%s2586_s24 + $0x40] sm:$0xf]  ;;  %v340_v10 = vld [vmem:[%s2586_s24 + $0x48] sm:$0xf] }
  0x18   : > { %v342_v11 = vld [vmem:[%s2586_s24 + $0x50] sm:$0xf]  ;;  %339 = vst [vmem:[%s300_s25 + $0x20] sm:$0xf] %v338_v9  ;;  %341 = vst [vmem:[%s300_s25 + $0x24] sm:$0xf] %v340_v10 }
  0x19   : > { %343 = vst [vmem:[%s300_s25 + $0x28] sm:$0xf] %v342_v11  ;;  %v344_v12 = vld [vmem:[%s2586_s24 + $0x58] sm:$0xf]  ;;  %v346_v13 = vld [vmem:[%s2586_s24 + $0x60] sm:$0xf] }
  0x1a   : > { %v348_v14 = vld [vmem:[%s2586_s24 + $0x68] sm:$0xf]  ;;  %345 = vst [vmem:[%s300_s25 + $0x2c] sm:$0xf] %v344_v12  ;;  %347 = vst [vmem:[%s300_s25 + $0x30] sm:$0xf] %v346_v13 }
  0x1b   : > { %349 = vst [vmem:[%s300_s25 + $0x34] sm:$0xf] %v348_v14  ;;  %v350_v15 = vld [vmem:[%s2586_s24 + $0x70] sm:$0xf]  ;;  %v352_v16 = vld [vmem:[%s2586_s24 + $0x78] sm:$0xf] }
  0x1c   : > { %351 = vst [vmem:[%s300_s25 + $0x38] sm:$0xf] %v350_v15  ;;  %353 = vst [vmem:[%s300_s25 + $0x3c] sm:$0xf] %v352_v16 }
  0x1d PF: > { %p2187_p6 = scmp.ge.s32.totalorder %s2483_s15, 1  ;;  %p408_p7 = scmp.lt.s32.totalorder %s2483_s15, 3 }
  0x1f   : > { %p409_p8 = pnand %p2187_p6, %p408_p7 }
  0x20   : > { %s415_s26 = sand.u32 (!%p409_p8), 1, %s2467_s11   ;;  %s2488_s10 = smov (!%p409_p8), 64  }
  0x21   : > { %412 = sbr.rel (%p409_p8) target bundleno = 4445 (0x115d), region = 93  ;;  %s2188_s29 = sshll.u32 (!%p409_p8), %s415_s26, 6 }
  0x22   : > { %s2614_s30 = scalar_lea.vmem (!%p409_p8), [#allocation5], %s2188_s29  ;;  %p450_p9 = scmp.lt.s32.totalorder (!%p409_p8), %s2475_s13, 1 }
  0x26   : > { %vm504_vm0 = vcmask 1040384   ;;  %vm505_vm1 = vcmask 1041408   ;;  %v2485_v17 = vmov 65535   ;;  %v2486_v20 = vmov 0   ;;  %v2324_v25 = vld [vmem:[%s2614_s30 + $0x10] sm:$0xff]   ;;  %v2328_v27 = vld [vmem:[%s2614_s30] sm:$0xff]  }
  0x27   : > { %v506_v18 = vsel %vm504_vm0, 4294967295, %v2485_v17  ;;  %v2201_v19 = vld.sshfl [vmem:[%s3018_s1] sm:$0x33 pattern:$0x76325410]  ;;  %696 = vmatprep.mubr.bf16.mxu0 %v2486_v20  ;;  %546 = vmatprep.mubr.bf16.mxu1 %v2486_v20  ;;  %vm459_vm2 = vcmask 523264   ;;  %v476_v41 = vlaneseq }
  0x28   : > { %v507_v21 = vsel %vm505_vm1, %v506_v18, 0  ;;  %v654_v22 = vcombine.high %v2201_v19, %v2201_v19  ;;  %v2487_v26 = vmov 0.0   ;;  %vm500_vm3 = vcmask 23552   ;;  %v2325_v28 = vld [vmem:[%s2614_s30 + $0x20] sm:$0xff]   ;;  %v2329_v32 = vld [vmem:[%s2614_s30 + $0x30] sm:$0xff]   ;;  %s3034_s13 = smov (!%p450_p9, %s2475_s13), 1 }
  0x29   : > { %v2612_v23 = vand.u32 %v2201_v19, %v507_v21  ;;  %460 = vst.msk [vmem:[#allocation2] sm:$0xff] %vm459_vm2, %v2487_v26  ;;  %461 = vst.msk [vmem:[#allocation2 + $0x8] sm:$0xff] %vm459_vm2, %v2487_v26  ;;  %v2643_v30 = vld [vmem:[%s3019_s2 + $0x34] ss:$8 sps:$4 sm:$0xff]   ;;  %v2654_v33 = vld [vmem:[%s3019_s2 + $0x30] ss:$8 sps:$4 sm:$0xff]  }
  0x2a   : > { %v2616_v24 = vand.u32 %v654_v22, %v507_v21  ;;  %v2659_v34 = vld [vmem:[%s3019_s2 + $0x24] ss:$8 sps:$4 sm:$0xff]   ;;  %v2666_v35 = vld [vmem:[%s3019_s2 + $0x20] ss:$8 sps:$4 sm:$0xff]   ;;  %v2673_v36 = vld [vmem:[%s3019_s2 + $0x14] ss:$8 sps:$4 sm:$0xff]  }
  0x2b   : > { %v2679_v37 = vld [vmem:[%s3019_s2 + $0x10] ss:$8 sps:$4 sm:$0xff]   ;;  %v2685_v38 = vld [vmem:[%s3019_s2 + $0x4] ss:$8 sps:$4 sm:$0xff]   ;;  %v2691_v39 = vld [vmem:[%s3019_s2] ss:$8 sps:$4 sm:$0xff]  }
  0x2c   : > { %678 = vmatprep.subr.bf16.mxu0 %v2616_v24  ;;  %528 = vmatprep.subr.bf16.mxu1 %v2616_v24  ;;  %v477_v42 = vshrl.u32 %v476_v41, 7  ;;  %v470_v44 = vld [vmem:[%s3020_s3] sm:$0x3]  ;;  %vm2489_vm4 = vmmov 0   ;;  %vm2093_vm5 = vcmask 261120   ;;  %s2189_s27 = sshll.u32 %s3034_s13, 3 }
  0x2d   : > { %679 = vmatpush1.bf16.msra.mxu0 %v2612_v23  ;;  %529 = vmatpush1.bf16.msra.mxu1 %v2612_v23  ;;  %v2752_v41 = vld [vmem:[%s3021_s4] ss:$0 sm:$0xff]  ;;  %s453_s11 = scalar_lea.vmem %s3026_s9, %s2189_s27  ;;  %vm2110_vm6 = vcmask 7168  }
  0x2e   : > { %828 = vmatprep.subr.bf16.mxu0 %v2616_v24  ;;  %603 = vmatprep.subr.bf16.mxu1 %v2616_v24  ;;  %v478_v43 = vsub.s32 0, %v477_v42  ;;  %v482_v45 = vsub.s32 1, %v477_v42 }
  0x30   : > { %2202 = vmatmul.mubr.msk.bf16.vlgmr.msra.gmra.mxu0 %vm500_vm3, %v2324_v25  ;;  %2192 = vmatmul.mubr.msk.bf16.vlgmr.msra.gmra.mxu1 %vm500_vm3, %v2328_v27  ;;  %v1087_v29 = vld [vmem:[#allocation2] sm:$0xff]  ;;  %v1088_v31 = vld [vmem:[#allocation2 + $0x8] sm:$0xff]  ;;  %v2709_v46 = vrot.slane %v470_v44, %v478_v43  ;;  %v2711_v47 = vrot.slane %v470_v44, %v482_v45 }
  0x31   : > { %829 = vmatpush1.bf16.msra.mxu0 %v2612_v23  ;;  %846 = vmatprep.mubr.bf16.mxu0 %v2486_v20  ;;  %v1089_v40 = vpack.c.bf16 %v1088_v31, %v1087_v29 }
  0x32   : > { %978 = vmatprep.subr.bf16.mxu0 %v2616_v24  ;;  %604 = vmatpush1.bf16.msra.mxu1 %v2612_v23 }
  0x33   : > { %1220 = vrot.lane.b32.xlu1 %v1087_v29, %s2488_s10  ;;  %621 = vmatprep.mubr.bf16.mxu1 %v2486_v20 }
  0x34   : > { %753 = vmatprep.subr.bf16.mxu1 %v2616_v24 }
  0x37   : > { %1222 = vrot.lane.b32.xlu1 %v1088_v31, %s2488_s10 }
  0x38   : > { %2212 = vmatmul.mubr.msk.bf16.vlgmr.msra.gmra.mxu0 %vm500_vm3, %v2325_v28 }
  0x39   : > { %979 = vmatpush1.bf16.msra.mxu0 %v2612_v23  ;;  %996 = vmatprep.mubr.bf16.mxu0 %v2486_v20 }
  0x3a   : > { %1141 = vmatprep.subr.bf16.mxu0 %v2643_v30 }
  0x40   : > { %2222 = vmatmul.mubr.msk.bf16.vlgmr.msra.gmra.mxu0 %vm500_vm3, %v2329_v32 }
  0x41   : > { %1142 = vmatpush1.bf16.msra.mxu0 %v2654_v33  ;;  %1165 = vmatprep.mubr.bf16.mxu0 %v2486_v20 }
  0x42   : > { %1143 = vmatprep.subr.bf16.mxu0 %v2659_v34 }
  0x45   : > { %1144 = vmatpush1.bf16.msra.mxu0 %v2666_v35 }
  0x46   : > { %1145 = vmatprep.subr.bf16.mxu0 %v2673_v36 }
  0x49   : > { %1146 = vmatpush1.bf16.msra.mxu0 %v2679_v37 }
  0x4a   : > { %1147 = vmatprep.subr.bf16.mxu0 %v2685_v38 }
  0x4d   : > { %1148 = vmatpush1.bf16.msra.mxu0 %v2691_v39 }
  0x4e   : > { %1361 = vmatprep.subr.bf16.mxu0 %v2643_v30 }
  0x50   : > { %2236 = vmatmul.mubr.msk.bf16.vlgmr.msra.gmra.mxu0 %vm459_vm2, %v1089_v40 }
  0x51   : > { %1362 = vmatpush1.bf16.msra.mxu0 %v2654_v33  ;;  %1385 = vmatprep.mubr.bf16.mxu0 %v2486_v20 }
  0x52   : > { %1363 = vmatprep.subr.bf16.mxu0 %v2659_v34 }
  0x55   : > { %1364 = vmatpush1.bf16.msra.mxu0 %v2666_v35 }
  0x56   : > { %1365 = vmatprep.subr.bf16.mxu0 %v2673_v36 }
  0x59   : > { %1366 = vmatpush1.bf16.msra.mxu0 %v2679_v37 }
  0x5a   : > { %1367 = vmatprep.subr.bf16.mxu0 %v2685_v38 }
  0x5d   : > { %1368 = vmatpush1.bf16.msra.mxu0 %v2691_v39 }
  0x5e   : > { %1575 = vmatprep.subr.bf16.mxu0 %v2643_v30 }
  0xf0   : > { %v698_v48 = vpop.f32.mrf.mxu0  ;;  %v548_v49 = vpop.f32.mrf.mxu1 }
  0xf1   : > { %v2714_v50 = vadd.f32 %v698_v48, %v2709_v46  ;;  %v549_v51 = vadd.f32 %v548_v49, %v2709_v46 }
  0xf2   : > { %v700_v52 = vpop.f32.mrf.mxu0  ;;  %v550_v53 = vpop.f32.mrf.mxu1 }
  0xf3   : > { %v701_v54 = vadd.f32 %v700_v52, %v2711_v47  ;;  %v551_v55 = vadd.f32 %v550_v53, %v2711_v47 }
  0xf4   : > { %v702_v56 = vpop.f32.mrf.mxu0  ;;  %v552_v57 = vpop.f32.mrf.mxu1 }
  0xf5   : > { %709 = vst.msk [vmem:[#allocation3 + $0x48] sm:$0xff] %vm459_vm2, %v701_v54  ;;  %v2721_v58 = vadd.f32 %v702_v56, %v2709_v46  ;;  %559 = vst.msk [vmem:[#allocation3 + $0x8] sm:$0xff] %vm459_vm2, %v551_v55  ;;  %v553_v59 = vadd.f32 %v552_v57, %v2709_v46  ;;  %v2340_v56 = vld [vmem:[%s2614_s30 + $0x8] sm:$0xff]  }
  0xf6   : > { %v704_v60 = vpop.f32.mrf.mxu0  ;;  %v554_v61 = vpop.f32.mrf.mxu1  ;;  %2197 = vmatmul.mubr.msk.bf16.vlgmr.msra.gmra.mxu1 %vm500_vm3, %v2340_v56 }
  0xf7   : > { %v705_v62 = vadd.f32 %v704_v60, %v2711_v47  ;;  %v555_v63 = vadd.f32 %v554_v61, %v2711_v47  ;;  %754 = vmatpush1.bf16.msra.mxu1 %v2612_v23  ;;  %771 = vmatprep.mubr.bf16.mxu1 %v2486_v20  ;;  %v2342_v61 = vld [vmem:[%s2614_s30 + $0x28] sm:$0xff]  }
  0xf8   : > { %v848_v0 = vpop.f32.mrf.mxu0  ;;  %903 = vmatprep.subr.bf16.mxu1 %v2616_v24 }
  0xf9   : > { %711 = vst.msk [vmem:[#allocation3 + $0x58] sm:$0xff] %vm459_vm2, %v705_v62  ;;  %v2729_v1 = vadd.f32 %v848_v0, %v2709_v46  ;;  %561 = vst.msk [vmem:[#allocation3 + $0x18] sm:$0xff] %vm459_vm2, %v555_v63  ;;  %v2343_v62 = vld [vmem:[%s2614_s30 + $0x38] sm:$0xff]  }
  0xfa   : > { %v850_v2 = vpop.f32.mrf.mxu0 }
  0xfb   : > { %v851_v3 = vadd.f32 %v850_v2, %v2711_v47 }
  0xfc   : > { %v852_v4 = vpop.f32.mrf.mxu0  ;;  %v1177_v48 = vld [vmem:[#allocation3 + $0x8] sm:$0xff] }
  0xfd   : > { %859 = vst.msk [vmem:[#allocation3 + $0x88] sm:$0xff] %vm459_vm2, %v851_v3  ;;  %v2735_v5 = vadd.f32 %v852_v4, %v2709_v46 }
  0xfe   : > { %v854_v6 = vpop.f32.mrf.mxu0 }
  0xff   : > { %v855_v7 = vadd.f32 %v854_v6, %v2711_v47 }
 0x100   : > { %v998_v8 = vpop.f32.mrf.mxu0  ;;  %v1179_v54 = vld [vmem:[#allocation3 + $0x18] sm:$0xff] }
 0x101   : > { %861 = vst.msk [vmem:[#allocation3 + $0x98] sm:$0xff] %vm459_vm2, %v855_v7  ;;  %v2740_v9 = vadd.f32 %v998_v8, %v2709_v46 }
 0x102   : > { %v1000_v10 = vpop.f32.mrf.mxu0 }
 0x103   : > { %v1001_v11 = vadd.f32 %v1000_v10, %v2711_v47 }
 0x104   : > { %v1002_v12 = vpop.f32.mrf.mxu0 }
 0x105   : > { %1009 = vst.msk [vmem:[#allocation3 + $0xc8] sm:$0xff] %vm459_vm2, %v1001_v11  ;;  %v2745_v13 = vadd.f32 %v1002_v12, %v2709_v46 }
 0x106   : > { %v1004_v14 = vpop.f32.mrf.mxu0 }
 0x107   : > { %v1005_v15 = vadd.f32 %v1004_v14, %v2711_v47 }
 0x109   : > { %1011 = vst.msk [vmem:[#allocation3 + $0xd8] sm:$0xff] %vm459_vm2, %v1005_v15 }
 0x110   : > { %v1167_v16 = vpop.f32.mrf.mxu0 }
 0x111   : > { %v1180_v17 = vadd.f32 %v1167_v16, %v549_v51 }
 0x112   : > { %v1169_v18 = vpop.f32.mrf.mxu0 }
 0x113   : > { %v1182_v19 = vsub.f32 0.0, %v1180_v17  ;;  %v1198_v42 = vadd.f32 %v2752_v41, %v1169_v18 }
 0x114   : > { %v1171_v21 = vpop.f32.mrf.mxu0 }
 0x115   : > { %v1184_v22 = vmul.f32 1.442695, %v1182_v19  ;;  %v1181_v25 = vadd.f32 %v1171_v21, %v553_v59  ;;  %v2341_v59 = vld [vmem:[%s2614_s30 + $0x18] sm:$0xff]  }
 0x116   : > { %v1173_v44 = vpop.f32.mrf.mxu0  ;;  %2207 = vmatmul.mubr.msk.bf16.vlgmr.msra.gmra.mxu1 %vm500_vm3, %v2341_v59 }
 0x117   : > { %2344 = vpow2.f32 %v1184_v22  ;;  %v1183_v27 = vsub.f32 0.0, %v1181_v25  ;;  %v1199_v51 = vadd.f32 %v2752_v41, %v1173_v44  ;;  %904 = vmatpush1.bf16.msra.mxu1 %v2612_v23  ;;  %921 = vmatprep.mubr.bf16.mxu1 %v2486_v20 }
 0x118   : > { %1053 = vmatprep.subr.bf16.mxu1 %v2616_v24 }
 0x119   : > { %v1186_v28 = vmul.f32 1.442695, %v1183_v27 }
 0x11b   : > { %2346 = vpow2.f32 %v1186_v28 }
 0x11e   : > { %2217 = vmatmul.mubr.msk.bf16.vlgmr.msra.gmra.mxu1 %vm500_vm3, %v2342_v61 }
 0x11f   : > { %1054 = vmatpush1.bf16.msra.mxu1 %v2612_v23  ;;  %1071 = vmatprep.mubr.bf16.mxu1 %v2486_v20  ;;  %v1221_v23 = vpop.permute.xlu1 %1220 }
 0x120   : > { %1254 = vmatprep.subr.bf16.mxu1 %v2643_v30 }
 0x123   : > { %v1223_v3 = vpop.permute.xlu1 %1222 }
 0x124   : > { %v2345_v29 = vpop.eup %2344 }
 0x125   : > { %v1188_v31 = vadd.f32 1.0, %v2345_v29 }
 0x126   : > { %2227 = vmatmul.mubr.msk.bf16.vlgmr.msra.gmra.mxu1 %vm500_vm3, %v2343_v62 }
 0x127   : > { %2348 = vrcp.f32 %v1188_v31  ;;  %1255 = vmatpush1.bf16.msra.mxu1 %v2654_v33  ;;  %1278 = vmatprep.mubr.bf16.mxu1 %v2486_v20 }
 0x128   : > { %v2347_v32 = vpop.eup %2346  ;;  %1256 = vmatprep.subr.bf16.mxu1 %v2659_v34 }
 0x129   : > { %v1189_v40 = vadd.f32 1.0, %v2347_v32 }
 0x12b   : > { %2350 = vrcp.f32 %v1189_v40  ;;  %1257 = vmatpush1.bf16.msra.mxu1 %v2666_v35 }
 0x12c   : > { %1258 = vmatprep.subr.bf16.mxu1 %v2673_v36 }
 0x12f   : > { %1259 = vmatpush1.bf16.msra.mxu1 %v2679_v37 }
 0x130   : > { %1260 = vmatprep.subr.bf16.mxu1 %v2685_v38 }
 0x133   : > { %1261 = vmatpush1.bf16.msra.mxu1 %v2691_v39 }
 0x134   : > { %v2349_v43 = vpop.eup %2348  ;;  %1468 = vmatprep.subr.bf16.mxu1 %v2643_v30 }
 0x135   : > { %v1200_v45 = vmul.f32 %v2349_v43, %v1198_v42  ;;  %v1206_v24 = vsub.f32 1.0, %v2349_v43  ;;  %v1226_v0 = vmul.f32 %v2349_v43, %v1221_v23 }
 0x137   : > { %v1202_v49 = vadd.f32 %v1200_v45, %v1177_v48 }
 0x138   : > { %v2351_v52 = vpop.eup %2350 }
 0x139   : > { %2352 = vtanh.f32 %v1202_v49  ;;  %v1201_v53 = vmul.f32 %v2351_v52, %v1199_v51  ;;  %v1207_v6 = vsub.f32 1.0, %v2351_v52  ;;  %v1227_v8 = vmul.f32 %v2351_v52, %v1223_v3 }
 0x13b   : > { %v1203_v55 = vadd.f32 %v1201_v53, %v1179_v54 }
 0x13d   : > { %2354 = vtanh.f32 %v1203_v55 }
 0x146   : > { %v2353_v57 = vpop.eup %2352 }
 0x147   : > { %1210 = vrot.lane.b32.xlu0 %v2353_v57, %s2488_s10 }
 0x14a   : > { %v2355_v60 = vpop.eup %2354 }
 0x14b   : > { %1212 = vrot.lane.b32.xlu0 %v2355_v60, %s2488_s10 }
 0x1b6   : > { %v623_v12 = vpop.f32.mrf.mxu1 }
 0x1b7   : > { %v624_v14 = vadd.f32 %v623_v12, %v2709_v46 }
 0x1b8   : > { %v625_v15 = vpop.f32.mrf.mxu1 }
 0x1b9   : > { %v1211_v63 = vpop.permute.xlu0 %1210  ;;  %v626_v16 = vadd.f32 %v625_v15, %v2711_v47 }
 0x1ba   : > { %v1216_v2 = vmul.f32 %v1211_v63, %v1206_v24  ;;  %v627_v17 = vpop.f32.mrf.mxu1 }
 0x1bb   : > { %634 = vst.msk [vmem:[#allocation3 + $0x28] sm:$0xff] %vm459_vm2, %v626_v16  ;;  %v628_v18 = vadd.f32 %v627_v17, %v2709_v46 }
 0x1bc   : > { %v1228_v4 = vadd.f32 %v1226_v0, %v1216_v2  ;;  %v629_v19 = vpop.f32.mrf.mxu1 }
 0x1bd   : > { %v1213_v7 = vpop.permute.xlu0 %1212  ;;  %v630_v21 = vadd.f32 %v629_v19, %v2711_v47 }
 0x1be   : > { %v1217_v10 = vmul.f32 %v1213_v7, %v1207_v6  ;;  %1232 = vrot.lane.b32.xlu0 %v1228_v4, %s2488_s10 }
 0x1bf   : > { %636 = vst.msk [vmem:[#allocation3 + $0x38] sm:$0xff] %vm459_vm2, %v630_v21 }
 0x1c0   : > { %v1229_v11 = vadd.f32 %v1227_v8, %v1217_v10 }
 0x1c2   : > { %1234 = vrot.lane.b32.xlu1 %v1229_v11, %s2488_s10 }
 0x1d6   : > { %v773_v22 = vpop.f32.mrf.mxu1 }
 0x1d7   : > { %v2793_v25 = vadd.f32 %v773_v22, %v2709_v46  ;;  %v1290_v22 = vld [vmem:[#allocation3 + $0x28] sm:$0xff] }
 0x1d8   : > { %v775_v27 = vpop.f32.mrf.mxu1 }
 0x1d9   : > { %v776_v28 = vadd.f32 %v775_v27, %v2711_v47 }
 0x1da   : > { %v777_v29 = vpop.f32.mrf.mxu1 }
 0x1db   : > { %784 = vst.msk [vmem:[#allocation3 + $0x68] sm:$0xff] %vm459_vm2, %v776_v28  ;;  %v2798_v31 = vadd.f32 %v777_v29, %v2709_v46 }
 0x1dc   : > { %v779_v32 = vpop.f32.mrf.mxu1 }
 0x1dd   : > { %v780_v40 = vadd.f32 %v779_v32, %v2711_v47  ;;  %v1292_v32 = vld [vmem:[#allocation3 + $0x38] sm:$0xff] }
 0x1de   : > { %v923_v42 = vpop.f32.mrf.mxu1 }
 0x1df   : > { %786 = vst.msk [vmem:[#allocation3 + $0x78] sm:$0xff] %vm459_vm2, %v780_v40  ;;  %v2803_v43 = vadd.f32 %v923_v42, %v2709_v46 }
 0x1e0   : > { %v925_v44 = vpop.f32.mrf.mxu1 }
 0x1e1   : > { %v926_v45 = vadd.f32 %v925_v44, %v2711_v47 }
 0x1e2   : > { %v927_v48 = vpop.f32.mrf.mxu1 }
 0x1e3   : > { %934 = vst.msk [vmem:[#allocation3 + $0xa8] sm:$0xff] %vm459_vm2, %v926_v45  ;;  %v2808_v49 = vadd.f32 %v927_v48, %v2709_v46 }
 0x1e4   : > { %v929_v51 = vpop.f32.mrf.mxu1 }
 0x1e5   : > { %v930_v52 = vadd.f32 %v929_v51, %v2711_v47 }
 0x1e6   : > { %v1073_v53 = vpop.f32.mrf.mxu1 }
 0x1e7   : > { %936 = vst.msk [vmem:[#allocation3 + $0xb8] sm:$0xff] %vm459_vm2, %v930_v52  ;;  %v2813_v54 = vadd.f32 %v1073_v53, %v2709_v46 }
 0x1e8   : > { %v1075_v55 = vpop.f32.mrf.mxu1 }
 0x1e9   : > { %v1076_v56 = vadd.f32 %v1075_v55, %v2711_v47 }
 0x1ea   : > { %v1077_v57 = vpop.f32.mrf.mxu1 }
 0x1eb   : > { %1084 = vst.msk [vmem:[#allocation3 + $0xe8] sm:$0xff] %vm459_vm2, %v1076_v56  ;;  %v2818_v59 = vadd.f32 %v1077_v57, %v2709_v46 }
 0x1ec   : > { %v1079_v60 = vpop.f32.mrf.mxu1 }
 0x1ed   : > { %v1080_v61 = vadd.f32 %v1079_v60, %v2711_v47 }
 0x1ef   : > { %1086 = vst.msk [vmem:[#allocation3 + $0xf8] sm:$0xff] %vm459_vm2, %v1080_v61 }
 0x230   : > { %v1233_v62 = vpop.permute.xlu0 %1232 }
 0x231   : > { %1238 = vst.msk [vmem:[#allocation2] sm:$0xff] %vm459_vm2, %v1233_v62 }
 0x234   : > { %v1235_v23 = vpop.permute.xlu1 %1234 }
 0x235   : > { %1239 = vst.msk [vmem:[#allocation2 + $0x8] sm:$0xff] %vm459_vm2, %v1235_v23 }
 0x238   : > { %v1240_v24 = vld [vmem:[#allocation2] sm:$0xff] }
 0x23c   : > { %v1241_v63 = vld [vmem:[#allocation2 + $0x8] sm:$0xff] }
 0x23d   : > { %v1242_v0 = vpack.c.bf16 %v1241_v63, %v1240_v24 }
 0x23f   : > { %2238 = vmatmul.mubr.msk.bf16.vlgmr.msra.gmra.mxu1 %vm459_vm2, %v1242_v0 }
 0x240   : > { %1469 = vmatpush1.bf16.msra.mxu1 %v2654_v33  ;;  %1492 = vmatprep.mubr.bf16.mxu1 %v2486_v20 }
 0x241   : > { %1470 = vmatprep.subr.bf16.mxu1 %v2659_v34 }
 0x244   : > { %1471 = vmatpush1.bf16.msra.mxu1 %v2666_v35 }
 0x245   : > { %1472 = vmatprep.subr.bf16.mxu1 %v2673_v36 }
 0x248   : > { %1473 = vmatpush1.bf16.msra.mxu1 %v2679_v37 }
 0x249   : > { %1474 = vmatprep.subr.bf16.mxu1 %v2685_v38 }
 0x24c   : > { %1475 = vmatpush1.bf16.msra.mxu1 %v2691_v39 }
 0x24d   : > { %1682 = vmatprep.subr.bf16.mxu1 %v2643_v30 }
 0x2ff   : > { %v1280_v46 = vpop.f32.mrf.mxu1 }
 0x300   : > { %v1293_v47 = vadd.f32 %v1280_v46, %v624_v14 }
 0x301   : > { %v1282_v2 = vpop.f32.mrf.mxu1 }
 0x302   : > { %v1295_v3 = vsub.f32 0.0, %v1293_v47  ;;  %v1305_v17 = vadd.f32 %v2752_v41, %v1282_v2 }
 0x303   : > { %v1284_v4 = vpop.f32.mrf.mxu1 }
 0x304   : > { %v1297_v6 = vmul.f32 1.442695, %v1295_v3  ;;  %v1294_v7 = vadd.f32 %v1284_v4, %v628_v18 }
 0x305   : > { %v1286_v21 = vpop.f32.mrf.mxu1 }
 0x306   : > { %2356 = vpow2.f32 %v1297_v6  ;;  %v1296_v8 = vsub.f32 0.0, %v1294_v7  ;;  %v1306_v28 = vadd.f32 %v2752_v41, %v1286_v21 }
 0x308   : > { %v1299_v10 = vmul.f32 1.442695, %v1296_v8 }
 0x30a   : > { %2358 = vpow2.f32 %v1299_v10 }
 0x313   : > { %v2357_v11 = vpop.eup %2356 }
 0x314   : > { %v1301_v12 = vadd.f32 1.0, %v2357_v11 }
 0x316   : > { %2360 = vrcp.f32 %v1301_v12 }
 0x317   : > { %v2359_v15 = vpop.eup %2358 }
 0x318   : > { %v1302_v16 = vadd.f32 1.0, %v2359_v15 }
 0x31a   : > { %2362 = vrcp.f32 %v1302_v16 }
 0x323   : > { %v2361_v19 = vpop.eup %2360 }
 0x324   : > { %v1307_v14 = vmul.f32 %v2361_v19, %v1305_v17  ;;  %v1313_v48 = vsub.f32 1.0, %v2361_v19 }
 0x326   : > { %v1309_v27 = vadd.f32 %v1307_v14, %v1290_v22 }
 0x327   : > { %v2363_v18 = vpop.eup %2362 }
 0x328   : > { %2364 = vtanh.f32 %v1309_v27  ;;  %v1308_v29 = vmul.f32 %v2363_v18, %v1306_v28  ;;  %v1314_v57 = vsub.f32 1.0, %v2363_v18  ;;  %v1397_v27 = vld [vmem:[#allocation3 + $0x48] sm:$0xff] }
 0x32a   : > { %v1310_v40 = vadd.f32 %v1308_v29, %v1292_v32  ;;  %v1399_v32 = vld [vmem:[#allocation3 + $0x58] sm:$0xff] }
 0x32c   : > { %2366 = vtanh.f32 %v1310_v40 }
 0x335   : > { %v2365_v42 = vpop.eup %2364 }
 0x336   : > { %1317 = vrot.lane.b32.xlu0 %v2365_v42, %s2488_s10 }
 0x339   : > { %v2367_v44 = vpop.eup %2366 }
 0x33a   : > { %1327 = vrot.lane.b32.xlu0 %v1240_v24, %s2488_s10  ;;  %1319 = vrot.lane.b32.xlu1 %v2367_v44, %s2488_s10 }
 0x33e   : > { %1329 = vrot.lane.b32.xlu1 %v1241_v63, %s2488_s10 }
 0x3a8   : > { %v1318_v45 = vpop.permute.xlu0 %1317 }
 0x3a9   : > { %v1323_v53 = vmul.f32 %v1318_v45, %v1313_v48 }
 0x3ac   : > { %v1328_v51 = vpop.permute.xlu0 %1327  ;;  %v1320_v52 = vpop.permute.xlu1 %1319 }
 0x3ad   : > { %v1333_v55 = vmul.f32 %v2361_v19, %v1328_v51  ;;  %v1324_v61 = vmul.f32 %v1320_v52, %v1314_v57 }
 0x3af   : > { %v1335_v56 = vadd.f32 %v1333_v55, %v1323_v53 }
 0x3b0   : > { %v1330_v60 = vpop.permute.xlu1 %1329 }
 0x3b1   : > { %v1334_v62 = vmul.f32 %v2363_v18, %v1330_v60  ;;  %1339 = vrot.lane.b32.xlu0 %v1335_v56, %s2488_s10 }
 0x3b3   : > { %v1336_v23 = vadd.f32 %v1334_v62, %v1324_v61 }
 0x3b5   : > { %1341 = vrot.lane.b32.xlu1 %v1336_v23, %s2488_s10 }
 0x423   : > { %v1340_v24 = vpop.permute.xlu0 %1339 }
 0x424   : > { %1345 = vst.msk [vmem:[#allocation2] sm:$0xff] %vm459_vm2, %v1340_v24 }
 0x427   : > { %v1342_v63 = vpop.permute.xlu1 %1341 }
 0x428   : > { %1346 = vst.msk [vmem:[#allocation2 + $0x8] sm:$0xff] %vm459_vm2, %v1342_v63 }
 0x42b   : > { %v1347_v0 = vld [vmem:[#allocation2] sm:$0xff] }
 0x42f   : > { %v1348_v46 = vld [vmem:[#allocation2 + $0x8] sm:$0xff] }
 0x430   : > { %v1349_v47 = vpack.c.bf16 %v1348_v46, %v1347_v0 }
 0x432   : > { %2239 = vmatmul.mubr.msk.bf16.vlgmr.msra.gmra.mxu0 %vm459_vm2, %v1349_v47 }
 0x433   : > { %1576 = vmatpush1.bf16.msra.mxu0 %v2654_v33  ;;  %1599 = vmatprep.mubr.bf16.mxu0 %v2486_v20 }
 0x434   : > { %1577 = vmatprep.subr.bf16.mxu0 %v2659_v34 }
 0x437   : > { %1578 = vmatpush1.bf16.msra.mxu0 %v2666_v35 }
 0x438   : > { %1579 = vmatprep.subr.bf16.mxu0 %v2673_v36 }
 0x43b   : > { %1580 = vmatpush1.bf16.msra.mxu0 %v2679_v37 }
 0x43c   : > { %1581 = vmatprep.subr.bf16.mxu0 %v2685_v38 }
 0x43f   : > { %1582 = vmatpush1.bf16.msra.mxu0 %v2691_v39 }
 0x440   : > { %1789 = vmatprep.subr.bf16.mxu0 %v2643_v30 }
 0x4f2   : > { %v1387_v2 = vpop.f32.mrf.mxu0 }
 0x4f3   : > { %v1400_v3 = vadd.f32 %v1387_v2, %v2714_v50 }
 0x4f4   : > { %v1389_v4 = vpop.f32.mrf.mxu0 }
 0x4f5   : > { %v1402_v6 = vsub.f32 0.0, %v1400_v3  ;;  %v1412_v21 = vadd.f32 %v2752_v41, %v1389_v4 }
 0x4f6   : > { %v1391_v7 = vpop.f32.mrf.mxu0 }
 0x4f7   : > { %v1404_v8 = vmul.f32 1.442695, %v1402_v6  ;;  %v1401_v10 = vadd.f32 %v1391_v7, %v2721_v58 }
 0x4f8   : > { %v1393_v50 = vpop.f32.mrf.mxu0 }
 0x4f9   : > { %2368 = vpow2.f32 %v1404_v8  ;;  %v1403_v11 = vsub.f32 0.0, %v1401_v10  ;;  %v1413_v18 = vadd.f32 %v2752_v41, %v1393_v50  ;;  %v1504_v50 = vld [vmem:[#allocation3 + $0x68] sm:$0xff] }
 0x4fb   : > { %v1406_v12 = vmul.f32 1.442695, %v1403_v11 }
 0x4fd   : > { %2370 = vpow2.f32 %v1406_v12 }
 0x506   : > { %v2369_v15 = vpop.eup %2368 }
 0x507   : > { %v1408_v16 = vadd.f32 1.0, %v2369_v15 }
 0x509   : > { %2372 = vrcp.f32 %v1408_v16 }
 0x50a   : > { %v2371_v17 = vpop.eup %2370 }
 0x50b   : > { %v1409_v19 = vadd.f32 1.0, %v2371_v17 }
 0x50d   : > { %2374 = vrcp.f32 %v1409_v19 }
 0x516   : > { %v2373_v14 = vpop.eup %2372 }
 0x517   : > { %v1414_v22 = vmul.f32 %v2373_v14, %v1412_v21  ;;  %v1420_v48 = vsub.f32 1.0, %v2373_v14 }
 0x519   : > { %v1416_v28 = vadd.f32 %v1414_v22, %v1397_v27 }
 0x51a   : > { %v2375_v58 = vpop.eup %2374 }
 0x51b   : > { %2376 = vtanh.f32 %v1416_v28  ;;  %v1415_v29 = vmul.f32 %v2375_v58, %v1413_v18  ;;  %v1421_v57 = vsub.f32 1.0, %v2375_v58  ;;  %v1506_v18 = vld [vmem:[#allocation3 + $0x78] sm:$0xff] }
 0x51d   : > { %v1417_v40 = vadd.f32 %v1415_v29, %v1399_v32 }
 0x51f   : > { %2378 = vtanh.f32 %v1417_v40 }
 0x528   : > { %v2377_v42 = vpop.eup %2376 }
 0x529   : > { %1424 = vrot.lane.b32.xlu0 %v2377_v42, %s2488_s10 }
 0x52c   : > { %v2379_v44 = vpop.eup %2378 }
 0x52d   : > { %1434 = vrot.lane.b32.xlu0 %v1347_v0, %s2488_s10  ;;  %1426 = vrot.lane.b32.xlu1 %v2379_v44, %s2488_s10 }
 0x531   : > { %1436 = vrot.lane.b32.xlu1 %v1348_v46, %s2488_s10 }
 0x59b   : > { %v1425_v45 = vpop.permute.xlu0 %1424 }
 0x59c   : > { %v1430_v53 = vmul.f32 %v1425_v45, %v1420_v48 }
 0x59f   : > { %v1435_v51 = vpop.permute.xlu0 %1434  ;;  %v1427_v52 = vpop.permute.xlu1 %1426 }
 0x5a0   : > { %v1440_v55 = vmul.f32 %v2373_v14, %v1435_v51  ;;  %v1431_v61 = vmul.f32 %v1427_v52, %v1421_v57 }
 0x5a2   : > { %v1442_v56 = vadd.f32 %v1440_v55, %v1430_v53 }
 0x5a3   : > { %v1437_v60 = vpop.permute.xlu1 %1436 }
 0x5a4   : > { %v1441_v62 = vmul.f32 %v2375_v58, %v1437_v60  ;;  %1446 = vrot.lane.b32.xlu0 %v1442_v56, %s2488_s10 }
 0x5a6   : > { %v1443_v23 = vadd.f32 %v1441_v62, %v1431_v61 }
 0x5a8   : > { %1448 = vrot.lane.b32.xlu1 %v1443_v23, %s2488_s10 }
 0x616   : > { %v1447_v24 = vpop.permute.xlu0 %1446 }
 0x617   : > { %1452 = vst.msk [vmem:[#allocation2] sm:$0xff] %vm459_vm2, %v1447_v24 }
 0x61a   : > { %v1449_v63 = vpop.permute.xlu1 %1448 }
 0x61b   : > { %1453 = vst.msk [vmem:[#allocation2 + $0x8] sm:$0xff] %vm459_vm2, %v1449_v63 }
 0x61e   : > { %v1454_v0 = vld [vmem:[#allocation2] sm:$0xff] }
 0x622   : > { %v1455_v46 = vld [vmem:[#allocation2 + $0x8] sm:$0xff] }
 0x623   : > { %v1456_v47 = vpack.c.bf16 %v1455_v46, %v1454_v0 }
 0x625   : > { %2240 = vmatmul.mubr.msk.bf16.vlgmr.msra.gmra.mxu1 %vm459_vm2, %v1456_v47 }
 0x626   : > { %1683 = vmatpush1.bf16.msra.mxu1 %v2654_v33  ;;  %1706 = vmatprep.mubr.bf16.mxu1 %v2486_v20 }
 0x627   : > { %1684 = vmatprep.subr.bf16.mxu1 %v2659_v34 }
 0x62a   : > { %1685 = vmatpush1.bf16.msra.mxu1 %v2666_v35 }
 0x62b   : > { %1686 = vmatprep.subr.bf16.mxu1 %v2673_v36 }
 0x62e   : > { %1687 = vmatpush1.bf16.msra.mxu1 %v2679_v37 }
 0x62f   : > { %1688 = vmatprep.subr.bf16.mxu1 %v2685_v38 }
 0x632   : > { %1689 = vmatpush1.bf16.msra.mxu1 %v2691_v39 }
 0x633   : > { %1896 = vmatprep.subr.bf16.mxu1 %v2643_v30 }
 0x6e5   : > { %v1494_v2 = vpop.f32.mrf.mxu1 }
 0x6e6   : > { %v1507_v3 = vadd.f32 %v1494_v2, %v2793_v25 }
 0x6e7   : > { %v1496_v4 = vpop.f32.mrf.mxu1 }
 0x6e8   : > { %v1509_v6 = vsub.f32 0.0, %v1507_v3  ;;  %v1519_v30 = vadd.f32 %v2752_v41, %v1496_v4 }
 0x6e9   : > { %v1498_v7 = vpop.f32.mrf.mxu1 }
 0x6ea   : > { %v1511_v8 = vmul.f32 1.442695, %v1509_v6  ;;  %v1508_v10 = vadd.f32 %v1498_v7, %v2798_v31 }
 0x6eb   : > { %v1500_v25 = vpop.f32.mrf.mxu1 }
 0x6ec   : > { %2380 = vpow2.f32 %v1511_v8  ;;  %v1510_v11 = vsub.f32 0.0, %v1508_v10  ;;  %v1520_v27 = vadd.f32 %v2752_v41, %v1500_v25 }
 0x6ee   : > { %v1513_v12 = vmul.f32 1.442695, %v1510_v11 }
 0x6f0   : > { %2382 = vpow2.f32 %v1513_v12 }
 0x6f9   : > { %v2381_v15 = vpop.eup %2380 }
 0x6fa   : > { %v1515_v16 = vadd.f32 1.0, %v2381_v15 }
 0x6fc   : > { %2384 = vrcp.f32 %v1515_v16 }
 0x6fd   : > { %v2383_v17 = vpop.eup %2382 }
 0x6fe   : > { %v1516_v19 = vadd.f32 1.0, %v2383_v17 }
 0x700   : > { %2386 = vrcp.f32 %v1516_v19 }
 0x709   : > { %v2385_v21 = vpop.eup %2384 }
 0x70a   : > { %v1521_v14 = vmul.f32 %v2385_v21, %v1519_v30  ;;  %v1527_v42 = vsub.f32 1.0, %v2385_v21  ;;  %v1611_v30 = vld [vmem:[#allocation3 + $0x88] sm:$0xff] }
 0x70c   : > { %v1523_v22 = vadd.f32 %v1521_v14, %v1504_v50  ;;  %v1613_v50 = vld [vmem:[#allocation3 + $0x98] sm:$0xff] }
 0x70d   : > { %v2387_v31 = vpop.eup %2386 }
 0x70e   : > { %2388 = vtanh.f32 %v1523_v22  ;;  %v1522_v28 = vmul.f32 %v2387_v31, %v1520_v27  ;;  %v1528_v53 = vsub.f32 1.0, %v2387_v31 }
 0x710   : > { %v1524_v58 = vadd.f32 %v1522_v28, %v1506_v18 }
 0x712   : > { %2390 = vtanh.f32 %v1524_v58 }
 0x71b   : > { %v2389_v29 = vpop.eup %2388 }
 0x71c   : > { %1531 = vrot.lane.b32.xlu0 %v2389_v29, %s2488_s10 }
 0x71f   : > { %v2391_v32 = vpop.eup %2390 }
 0x720   : > { %1541 = vrot.lane.b32.xlu0 %v1454_v0, %s2488_s10  ;;  %1533 = vrot.lane.b32.xlu1 %v2391_v32, %s2488_s10 }
 0x724   : > { %1543 = vrot.lane.b32.xlu1 %v1455_v46, %s2488_s10 }
 0x78e   : > { %v1532_v40 = vpop.permute.xlu0 %1531 }
 0x78f   : > { %v1537_v48 = vmul.f32 %v1532_v40, %v1527_v42 }
 0x792   : > { %v1542_v44 = vpop.permute.xlu0 %1541  ;;  %v1534_v45 = vpop.permute.xlu1 %1533 }
 0x793   : > { %v1547_v51 = vmul.f32 %v2385_v21, %v1542_v44  ;;  %v1538_v56 = vmul.f32 %v1534_v45, %v1528_v53 }
 0x795   : > { %v1549_v52 = vadd.f32 %v1547_v51, %v1537_v48 }
 0x796   : > { %v1544_v55 = vpop.permute.xlu1 %1543 }
 0x797   : > { %v1548_v57 = vmul.f32 %v2387_v31, %v1544_v55  ;;  %1553 = vrot.lane.b32.xlu0 %v1549_v52, %s2488_s10 }
 0x799   : > { %v1550_v60 = vadd.f32 %v1548_v57, %v1538_v56 }
 0x79b   : > { %1555 = vrot.lane.b32.xlu1 %v1550_v60, %s2488_s10 }
 0x809   : > { %v1554_v61 = vpop.permute.xlu0 %1553 }
 0x80a   : > { %1559 = vst.msk [vmem:[#allocation2] sm:$0xff] %vm459_vm2, %v1554_v61 }
 0x80d   : > { %v1556_v62 = vpop.permute.xlu1 %1555 }
 0x80e   : > { %1560 = vst.msk [vmem:[#allocation2 + $0x8] sm:$0xff] %vm459_vm2, %v1556_v62 }
 0x811   : > { %v1561_v23 = vld [vmem:[#allocation2] sm:$0xff] }
 0x815   : > { %v1562_v24 = vld [vmem:[#allocation2 + $0x8] sm:$0xff] }
 0x816   : > { %v1563_v63 = vpack.c.bf16 %v1562_v24, %v1561_v23 }
 0x818   : > { %2241 = vmatmul.mubr.msk.bf16.vlgmr.msra.gmra.mxu0 %vm459_vm2, %v1563_v63 }
 0x819   : > { %1790 = vmatpush1.bf16.msra.mxu0 %v2654_v33  ;;  %1813 = vmatprep.mubr.bf16.mxu0 %v2486_v20 }
 0x81a   : > { %1791 = vmatprep.subr.bf16.mxu0 %v2659_v34 }
 0x81d   : > { %1792 = vmatpush1.bf16.msra.mxu0 %v2666_v35 }
 0x81e   : > { %1793 = vmatprep.subr.bf16.mxu0 %v2673_v36 }
 0x821   : > { %1794 = vmatpush1.bf16.msra.mxu0 %v2679_v37 }
 0x822   : > { %1795 = vmatprep.subr.bf16.mxu0 %v2685_v38 }
 0x825   : > { %1796 = vmatpush1.bf16.msra.mxu0 %v2691_v39 }
 0x826   : > { %2260 = vmatprep.subr.mxu0 %v2487_v26 }
 0x8d8   : > { %v1601_v0 = vpop.f32.mrf.mxu0 }
 0x8d9   : > { %v1614_v46 = vadd.f32 %v1601_v0, %v2729_v1 }
 0x8da   : > { %v1603_v47 = vpop.f32.mrf.mxu0 }
 0x8db   : > { %v1616_v2 = vsub.f32 0.0, %v1614_v46  ;;  %v1626_v16 = vadd.f32 %v2752_v41, %v1603_v47 }
 0x8dc   : > { %v1605_v3 = vpop.f32.mrf.mxu0 }
 0x8dd   : > { %v1618_v4 = vmul.f32 1.442695, %v1616_v2  ;;  %v1615_v6 = vadd.f32 %v1605_v3, %v2735_v5  ;;  %v1718_v2 = vld [vmem:[#allocation3 + $0xa8] sm:$0xff] }
 0x8de   : > { %v1607_v1 = vpop.f32.mrf.mxu0 }
 0x8df   : > { %2392 = vpow2.f32 %v1618_v4  ;;  %v1617_v7 = vsub.f32 0.0, %v1615_v6  ;;  %v1627_v25 = vadd.f32 %v2752_v41, %v1607_v1 }
 0x8e1   : > { %v1620_v8 = vmul.f32 1.442695, %v1617_v7  ;;  %v1720_v7 = vld [vmem:[#allocation3 + $0xb8] sm:$0xff] }
 0x8e3   : > { %2394 = vpow2.f32 %v1620_v8 }
 0x8ec   : > { %v2393_v10 = vpop.eup %2392 }
 0x8ed   : > { %v1622_v11 = vadd.f32 1.0, %v2393_v10 }
 0x8ef   : > { %2396 = vrcp.f32 %v1622_v11 }
 0x8f0   : > { %v2395_v12 = vpop.eup %2394 }
 0x8f1   : > { %v1623_v15 = vadd.f32 1.0, %v2395_v12 }
 0x8f3   : > { %2398 = vrcp.f32 %v1623_v15 }
 0x8fc   : > { %v2397_v17 = vpop.eup %2396 }
 0x8fd   : > { %v1628_v19 = vmul.f32 %v2397_v17, %v1626_v16  ;;  %v1634_v18 = vsub.f32 1.0, %v2397_v17 }
 0x8ff   : > { %v1630_v21 = vadd.f32 %v1628_v19, %v1611_v30 }
 0x900   : > { %v2399_v5 = vpop.eup %2398 }
 0x901   : > { %2400 = vtanh.f32 %v1630_v21  ;;  %v1629_v14 = vmul.f32 %v2399_v5, %v1627_v25  ;;  %v1635_v44 = vsub.f32 1.0, %v2399_v5 }
 0x903   : > { %v1631_v22 = vadd.f32 %v1629_v14, %v1613_v50 }
 0x905   : > { %2402 = vtanh.f32 %v1631_v22 }
 0x90e   : > { %v2401_v27 = vpop.eup %2400 }
 0x90f   : > { %1638 = vrot.lane.b32.xlu0 %v2401_v27, %s2488_s10 }
 0x912   : > { %v2403_v31 = vpop.eup %2402 }
 0x913   : > { %1648 = vrot.lane.b32.xlu0 %v1561_v23, %s2488_s10  ;;  %1640 = vrot.lane.b32.xlu1 %v2403_v31, %s2488_s10 }
 0x917   : > { %1650 = vrot.lane.b32.xlu1 %v1562_v24, %s2488_s10 }
 0x981   : > { %v1639_v28 = vpop.permute.xlu0 %1638 }
 0x982   : > { %v1644_v32 = vmul.f32 %v1639_v28, %v1634_v18 }
 0x985   : > { %v1649_v58 = vpop.permute.xlu0 %1648  ;;  %v1641_v29 = vpop.permute.xlu1 %1640 }
 0x986   : > { %v1654_v40 = vmul.f32 %v2397_v17, %v1649_v58  ;;  %v1645_v48 = vmul.f32 %v1641_v29, %v1635_v44 }
 0x988   : > { %v1656_v42 = vadd.f32 %v1654_v40, %v1644_v32 }
 0x989   : > { %v1651_v45 = vpop.permute.xlu1 %1650 }
 0x98a   : > { %v1655_v51 = vmul.f32 %v2399_v5, %v1651_v45  ;;  %1660 = vrot.lane.b32.xlu0 %v1656_v42, %s2488_s10 }
 0x98c   : > { %v1657_v52 = vadd.f32 %v1655_v51, %v1645_v48 }
 0x98e   : > { %1662 = vrot.lane.b32.xlu1 %v1657_v52, %s2488_s10 }
 0x9fc   : > { %v1661_v53 = vpop.permute.xlu0 %1660 }
 0x9fd   : > { %1666 = vst.msk [vmem:[#allocation2] sm:$0xff] %vm459_vm2, %v1661_v53 }
 0xa00   : > { %v1663_v55 = vpop.permute.xlu1 %1662 }
 0xa01   : > { %1667 = vst.msk [vmem:[#allocation2 + $0x8] sm:$0xff] %vm459_vm2, %v1663_v55 }
 0xa04   : > { %v1668_v56 = vld [vmem:[#allocation2] sm:$0xff] }
 0xa08   : > { %v1669_v57 = vld [vmem:[#allocation2 + $0x8] sm:$0xff] }
 0xa09   : > { %v1670_v60 = vpack.c.bf16 %v1669_v57, %v1668_v56 }
 0xa0b   : > { %2242 = vmatmul.mubr.msk.bf16.vlgmr.msra.gmra.mxu1 %vm459_vm2, %v1670_v60 }
 0xa0c   : > { %1897 = vmatpush1.bf16.msra.mxu1 %v2654_v33  ;;  %1920 = vmatprep.mubr.bf16.mxu1 %v2486_v20 }
 0xa0d   : > { %1898 = vmatprep.subr.bf16.mxu1 %v2659_v34 }
 0xa10   : > { %1899 = vmatpush1.bf16.msra.mxu1 %v2666_v35 }
 0xa11   : > { %1900 = vmatprep.subr.bf16.mxu1 %v2673_v36 }
 0xa14   : > { %1901 = vmatpush1.bf16.msra.mxu1 %v2679_v37 }
 0xa15   : > { %1902 = vmatprep.subr.bf16.mxu1 %v2685_v38 }
 0xa18   : > { %1903 = vmatpush1.bf16.msra.mxu1 %v2691_v39 }
 0xacb   : > { %v1708_v61 = vpop.f32.mrf.mxu1 }
 0xacc   : > { %v1721_v62 = vadd.f32 %v1708_v61, %v2803_v43 }
 0xacd   : > { %v1710_v23 = vpop.f32.mrf.mxu1 }
 0xace   : > { %v1723_v24 = vsub.f32 0.0, %v1721_v62  ;;  %v1733_v39 = vadd.f32 %v2752_v41, %v1710_v23  ;;  %v1825_v62 = vld [vmem:[#allocation3 + $0xc8] sm:$0xff] }
 0xacf   : > { %v1712_v33 = vpop.f32.mrf.mxu1 }
 0xad0   : > { %v1725_v63 = vmul.f32 1.442695, %v1723_v24  ;;  %v1722_v20 = vadd.f32 %v1712_v33, %v2808_v49 }
 0xad1   : > { %v1714_v43 = vpop.f32.mrf.mxu1 }
 0xad2   : > { %2404 = vpow2.f32 %v1725_v63  ;;  %v1724_v34 = vsub.f32 0.0, %v1722_v20  ;;  %v1734_v4 = vadd.f32 %v2752_v41, %v1714_v43  ;;  %v1827_v63 = vld [vmem:[#allocation3 + $0xd8] sm:$0xff] }
 0xad4   : > { %v1727_v35 = vmul.f32 1.442695, %v1724_v34 }
 0xad6   : > { %2406 = vpow2.f32 %v1727_v35 }
 0xadf   : > { %v2405_v36 = vpop.eup %2404 }
 0xae0   : > { %v1729_v0 = vadd.f32 1.0, %v2405_v36 }
 0xae2   : > { %2408 = vrcp.f32 %v1729_v0 }
 0xae3   : > { %v2407_v37 = vpop.eup %2406 }
 0xae4   : > { %v1730_v38 = vadd.f32 1.0, %v2407_v37 }
 0xae6   : > { %2410 = vrcp.f32 %v1730_v38 }
 0xaef   : > { %v2409_v46 = vpop.eup %2408 }
 0xaf0   : > { %v1735_v47 = vmul.f32 %v2409_v46, %v1733_v39  ;;  %v1741_v15 = vsub.f32 1.0, %v2409_v46 }
 0xaf2   : > { %v1737_v3 = vadd.f32 %v1735_v47, %v1718_v2 }
 0xaf3   : > { %v2411_v49 = vpop.eup %2410 }
 0xaf4   : > { %2412 = vtanh.f32 %v1737_v3  ;;  %v1736_v6 = vmul.f32 %v2411_v49, %v1734_v4  ;;  %v1742_v21 = vsub.f32 1.0, %v2411_v49 }
 0xaf6   : > { %v1738_v8 = vadd.f32 %v1736_v6, %v1720_v7 }
 0xaf8   : > { %2414 = vtanh.f32 %v1738_v8 }
 0xb01   : > { %v2413_v10 = vpop.eup %2412 }
 0xb02   : > { %1745 = vrot.lane.b32.xlu0 %v2413_v10, %s2488_s10 }
 0xb05   : > { %v2415_v11 = vpop.eup %2414 }
 0xb06   : > { %1755 = vrot.lane.b32.xlu0 %v1668_v56, %s2488_s10  ;;  %1747 = vrot.lane.b32.xlu1 %v2415_v11, %s2488_s10 }
 0xb0a   : > { %1757 = vrot.lane.b32.xlu1 %v1669_v57, %s2488_s10 }
 0xb74   : > { %v1746_v12 = vpop.permute.xlu0 %1745 }
 0xb75   : > { %v1751_v1 = vmul.f32 %v1746_v12, %v1741_v15 }
 0xb78   : > { %v1756_v16 = vpop.permute.xlu0 %1755  ;;  %v1748_v17 = vpop.permute.xlu1 %1747 }
 0xb79   : > { %v1761_v19 = vmul.f32 %v2409_v46, %v1756_v16  ;;  %v1752_v5 = vmul.f32 %v1748_v17, %v1742_v21 }
 0xb7b   : > { %v1763_v30 = vadd.f32 %v1761_v19, %v1751_v1 }
 0xb7c   : > { %v1758_v25 = vpop.permute.xlu1 %1757 }
 0xb7d   : > { %v1762_v14 = vmul.f32 %v2411_v49, %v1758_v25  ;;  %1767 = vrot.lane.b32.xlu0 %v1763_v30, %s2488_s10 }
 0xb7f   : > { %v1764_v50 = vadd.f32 %v1762_v14, %v1752_v5 }
 0xb81   : > { %1769 = vrot.lane.b32.xlu1 %v1764_v50, %s2488_s10 }
 0xbef   : > { %v1768_v22 = vpop.permute.xlu0 %1767 }
 0xbf0   : > { %1773 = vst.msk [vmem:[#allocation2] sm:$0xff] %vm459_vm2, %v1768_v22 }
 0xbf3   : > { %v1770_v27 = vpop.permute.xlu1 %1769 }
 0xbf4   : > { %1774 = vst.msk [vmem:[#allocation2 + $0x8] sm:$0xff] %vm459_vm2, %v1770_v27 }
 0xbf7   : > { %v1775_v31 = vld [vmem:[#allocation2] sm:$0xff] }
 0xbfb   : > { %v1776_v28 = vld [vmem:[#allocation2 + $0x8] sm:$0xff] }
 0xbfc   : > { %v1777_v18 = vpack.c.bf16 %v1776_v28, %v1775_v31 }
 0xbfe   : > { %2243 = vmatmul.mubr.msk.bf16.vlgmr.msra.gmra.mxu0 %vm459_vm2, %v1777_v18  ;;  %v1932_v18 = vld [vmem:[#allocation3 + $0xe8] sm:$0xff] }
 0xbff   : > { %2276 = vmatprep.mubr.msk.f32.mxu0 %vm2489_vm4, %v2487_v26 }
 0xcbe   : > { %v1815_v58 = vpop.f32.mrf.mxu0 }
 0xcbf   : > { %v1828_v29 = vadd.f32 %v1815_v58, %v2740_v9 }
 0xcc0   : > { %v1817_v32 = vpop.f32.mrf.mxu0 }
 0xcc1   : > { %v1830_v40 = vsub.f32 0.0, %v1828_v29  ;;  %v1840_v57 = vadd.f32 %v2752_v41, %v1817_v32 }
 0xcc2   : > { %v1819_v42 = vpop.f32.mrf.mxu0 }
 0xcc3   : > { %v1832_v44 = vmul.f32 1.442695, %v1830_v40  ;;  %v1829_v45 = vadd.f32 %v1819_v42, %v2745_v13  ;;  %v1934_v40 = vld [vmem:[#allocation3 + $0xf8] sm:$0xff] }
 0xcc4   : > { %v1821_v9 = vpop.f32.mrf.mxu0 }
 0xcc5   : > { %2416 = vpow2.f32 %v1832_v44  ;;  %v1831_v48 = vsub.f32 0.0, %v1829_v45  ;;  %v1841_v24 = vadd.f32 %v2752_v41, %v1821_v9 }
 0xcc7   : > { %v1834_v51 = vmul.f32 1.442695, %v1831_v48  ;;  %v2003_v48 = vld [vmem:[%s3022_s5 + $0x38] sm:$0xff] }
 0xcc8   : > { %2261 = vmatpush3.msra.mxu0 %v2003_v48 }
 0xcc9   : > { %2418 = vpow2.f32 %v1834_v51  ;;  %v2002_v51 = vld [vmem:[%s3022_s5 + $0x30] sm:$0xff]  ;;  %2262 = vmatprep.subr.mxu0 %v2487_v26 }
 0xcca   : > { %2263 = vmatpush3.msra.mxu0 %v2002_v51 }
 0xccb   : > { %2264 = vmatprep.subr.mxu0 %v2487_v26 }
 0xcd2   : > { %v2417_v52 = vpop.eup %2416 }
 0xcd3   : > { %v1836_v53 = vadd.f32 1.0, %v2417_v52 }
 0xcd5   : > { %2420 = vrcp.f32 %v1836_v53  ;;  %v2001_v53 = vld [vmem:[%s3022_s5 + $0x28] sm:$0xff] }
 0xcd6   : > { %v2419_v55 = vpop.eup %2418  ;;  %2265 = vmatpush3.msra.mxu0 %v2001_v53 }
 0xcd7   : > { %v1837_v56 = vadd.f32 1.0, %v2419_v55  ;;  %v2000_v55 = vld [vmem:[%s3022_s5 + $0x20] sm:$0xff]  ;;  %2266 = vmatprep.subr.mxu0 %v2487_v26 }
 0xcd8   : > { %2267 = vmatpush3.msra.mxu0 %v2000_v55 }
 0xcd9   : > { %2422 = vrcp.f32 %v1837_v56  ;;  %v1999_v56 = vld [vmem:[%s3022_s5 + $0x18] sm:$0xff]  ;;  %2268 = vmatprep.subr.mxu0 %v2487_v26 }
 0xcda   : > { %2269 = vmatpush3.msra.mxu0 %v1999_v56 }
 0xcdb   : > { %2270 = vmatprep.subr.mxu0 %v2487_v26 }
 0xce2   : > { %v2421_v60 = vpop.eup %2420 }
 0xce3   : > { %v1842_v61 = vmul.f32 %v2421_v60, %v1840_v57  ;;  %v1848_v0 = vsub.f32 1.0, %v2421_v60 }
 0xce5   : > { %v1844_v23 = vadd.f32 %v1842_v61, %v1825_v62  ;;  %v1998_v61 = vld [vmem:[%s3022_s5 + $0x10] sm:$0xff] }
 0xce6   : > { %v2423_v13 = vpop.eup %2422  ;;  %2271 = vmatpush3.msra.mxu0 %v1998_v61 }
 0xce7   : > { %2424 = vtanh.f32 %v1844_v23  ;;  %v1843_v33 = vmul.f32 %v2423_v13, %v1841_v24  ;;  %v1849_v43 = vsub.f32 1.0, %v2423_v13  ;;  %v1997_v24 = vld [vmem:[%s3022_s5 + $0x8] sm:$0xff]  ;;  %2272 = vmatprep.subr.mxu0 %v2487_v26 }
 0xce8   : > { %2273 = vmatpush3.msra.mxu0 %v1997_v24 }
 0xce9   : > { %v1845_v20 = vadd.f32 %v1843_v33, %v1827_v63  ;;  %2274 = vmatprep.subr.mxu0 %v2487_v26  ;;  %v2245_v26 = vld [vmem:[%s3023_s6] ss:$0 sm:$0xff] }
 0xceb   : > { %2426 = vtanh.f32 %v1845_v20  ;;  %v1996_v20 = vld [vmem:[%s3022_s5] sm:$0xff] }
 0xcec   : > { %2275 = vmatpush3.msra.mxu0 %v1996_v20 }
 0xcf4   : > { %v2425_v34 = vpop.eup %2424 }
 0xcf5   : > { %1852 = vrot.lane.b32.xlu0 %v2425_v34, %s2488_s10 }
 0xcf8   : > { %v2427_v35 = vpop.eup %2426 }
 0xcf9   : > { %1862 = vrot.lane.b32.xlu0 %v1775_v31, %s2488_s10  ;;  %1854 = vrot.lane.b32.xlu1 %v2427_v35, %s2488_s10 }
 0xcfd   : > { %1864 = vrot.lane.b32.xlu1 %v1776_v28, %s2488_s10 }
 0xd67   : > { %v1853_v36 = vpop.permute.xlu0 %1852 }
 0xd68   : > { %v1858_v38 = vmul.f32 %v1853_v36, %v1848_v0 }
 0xd6b   : > { %v1863_v37 = vpop.permute.xlu0 %1862  ;;  %v1855_v41 = vpop.permute.xlu1 %1854 }
 0xd6c   : > { %v1868_v39 = vmul.f32 %v2421_v60, %v1863_v37  ;;  %v1859_v2 = vmul.f32 %v1855_v41, %v1849_v43 }
 0xd6e   : > { %v1870_v46 = vadd.f32 %v1868_v39, %v1858_v38 }
 0xd6f   : > { %v1865_v47 = vpop.permute.xlu1 %1864 }
 0xd70   : > { %v1869_v3 = vmul.f32 %v2423_v13, %v1865_v47  ;;  %1874 = vrot.lane.b32.xlu0 %v1870_v46, %s2488_s10 }
 0xd72   : > { %v1871_v4 = vadd.f32 %v1869_v3, %v1859_v2  ;;  %v2247_v3 = vld [vmem:[%s3024_s7] ss:$0 sm:$0xff] }
 0xd74   : > { %1876 = vrot.lane.b32.xlu1 %v1871_v4, %s2488_s10 }
 0xde2   : > { %v1875_v49 = vpop.permute.xlu0 %1874 }
 0xde3   : > { %1880 = vst.msk [vmem:[#allocation2] sm:$0xff] %vm459_vm2, %v1875_v49 }
 0xde6   : > { %v1877_v6 = vpop.permute.xlu1 %1876 }
 0xde7   : > { %1881 = vst.msk [vmem:[#allocation2 + $0x8] sm:$0xff] %vm459_vm2, %v1877_v6 }
 0xdea   : > { %v1882_v7 = vld [vmem:[#allocation2] sm:$0xff] }
 0xdee   : > { %v1883_v8 = vld [vmem:[#allocation2 + $0x8] sm:$0xff] }
 0xdef   : > { %v1884_v10 = vpack.c.bf16 %v1883_v8, %v1882_v7 }
 0xdf1   : > { %2244 = vmatmul.mubr.msk.bf16.vlgmr.msra.gmra.mxu1 %vm459_vm2, %v1884_v10 }
 0xeb1   : > { %v1922_v11 = vpop.f32.mrf.mxu1 }
 0xeb2   : > { %v1935_v12 = vadd.f32 %v1922_v11, %v2813_v54  ;;  %v2444_v54 = vld [vmem:[%s3021_s4] ss:$0 sm:$0xff] }
 0xeb3   : > { %v1924_v15 = vpop.f32.mrf.mxu1 }
 0xeb4   : > { %v1937_v16 = vsub.f32 0.0, %v1935_v12  ;;  %v1947_v22 = vadd.f32 %v2444_v54, %v1924_v15 }
 0xeb5   : > { %v1926_v17 = vpop.f32.mrf.mxu1 }
 0xeb6   : > { %v1939_v1 = vmul.f32 1.442695, %v1937_v16  ;;  %v1936_v19 = vadd.f32 %v1926_v17, %v2818_v59 }
 0xeb7   : > { %v1928_v31 = vpop.f32.mrf.mxu1 }
 0xeb8   : > { %2428 = vpow2.f32 %v1939_v1  ;;  %v1938_v30 = vsub.f32 0.0, %v1936_v19  ;;  %v1948_v58 = vadd.f32 %v2444_v54, %v1928_v31 }
 0xeba   : > { %v1941_v21 = vmul.f32 1.442695, %v1938_v30 }
 0xebc   : > { %2430 = vpow2.f32 %v1941_v21 }
 0xec5   : > { %v2429_v25 = vpop.eup %2428 }
 0xec6   : > { %v1943_v5 = vadd.f32 1.0, %v2429_v25 }
 0xec8   : > { %2432 = vrcp.f32 %v1943_v5 }
 0xec9   : > { %v2431_v14 = vpop.eup %2430 }
 0xeca   : > { %v1944_v50 = vadd.f32 1.0, %v2431_v14 }
 0xecc   : > { %2434 = vrcp.f32 %v1944_v50 }
 0xed5   : > { %v2433_v27 = vpop.eup %2432 }
 0xed6   : > { %v1949_v28 = vmul.f32 %v2433_v27, %v1947_v22  ;;  %v1955_v57 = vsub.f32 1.0, %v2433_v27 }
 0xed8   : > { %v1951_v59 = vadd.f32 %v1949_v28, %v1932_v18 }
 0xed9   : > { %v2435_v29 = vpop.eup %2434 }
 0xeda   : > { %2436 = vtanh.f32 %v1951_v59  ;;  %v1950_v32 = vmul.f32 %v2435_v29, %v1948_v58  ;;  %v1956_v33 = vsub.f32 1.0, %v2435_v29 }
 0xedc   : > { %v1952_v42 = vadd.f32 %v1950_v32, %v1934_v40 }
 0xede   : > { %2438 = vtanh.f32 %v1952_v42 }
 0xee7   : > { %v2437_v44 = vpop.eup %2436 }
 0xee8   : > { %1959 = vrot.lane.b32.xlu0 %v2437_v44, %s2488_s10 }
 0xeeb   : > { %v2439_v45 = vpop.eup %2438 }
 0xeec   : > { %1969 = vrot.lane.b32.xlu0 %v1882_v7, %s2488_s10  ;;  %1961 = vrot.lane.b32.xlu1 %v2439_v45, %s2488_s10  ;;  %v2248_v7 = vld [vmem:[#allocation4] ss:$0 sm:$0xff] }
 0xef0   : > { %1971 = vrot.lane.b32.xlu1 %v1883_v8, %s2488_s10 }
 0xf5a   : > { %v1960_v52 = vpop.permute.xlu0 %1959 }
 0xf5b   : > { %v1965_v62 = vmul.f32 %v1960_v52, %v1955_v57 }
 0xf5e   : > { %v1970_v60 = vpop.permute.xlu0 %1969  ;;  %v1962_v9 = vpop.permute.xlu1 %1961 }
 0xf5f   : > { %v1975_v23 = vmul.f32 %v2433_v27, %v1970_v60  ;;  %v1966_v34 = vmul.f32 %v1962_v9, %v1956_v33 }
 0xf61   : > { %v1977_v13 = vadd.f32 %v1975_v23, %v1965_v62 }
 0xf62   : > { %v1972_v63 = vpop.permute.xlu1 %1971 }
 0xf63   : > { %v1976_v35 = vmul.f32 %v2435_v29, %v1972_v63  ;;  %1981 = vrot.lane.b32.xlu0 %v1977_v13, %s2488_s10 }
 0xf65   : > { %v1978_v36 = vadd.f32 %v1976_v35, %v1966_v34 }
 0xf67   : > { %1983 = vrot.lane.b32.xlu1 %v1978_v36, %s2488_s10 }
 0xfd5   : > { %v1982_v0 = vpop.permute.xlu0 %1981 }
 0xfd6   : > { %1987 = vst.msk [vmem:[#allocation2] sm:$0xff] %vm459_vm2, %v1982_v0 }
 0xfd9   : > { %v1984_v37 = vpop.permute.xlu1 %1983 }
 0xfda   : > { %1988 = vst.msk [vmem:[#allocation2 + $0x8] sm:$0xff] %vm459_vm2, %v1984_v37 }
 0xfdd   : > { %v1992_v41 = vld [vmem:[#allocation2] sm:$0xff] }
 0xfe1   : > { %v1993_v38 = vld [vmem:[#allocation2 + $0x8] sm:$0xff] }
 0xfe2   : > { %v1994_v39 = vsub.f32 %v1992_v41, %v1993_v38 }
 0xfe4   : > { %v1995_v46 = vand.u32 2147483647, %v1994_v39 }
 0xfe6   : > { %2277 = vmatmul.mubr.msk.f32.vlgmr.msra.gmra.mxu0 %vm459_vm2, %v1995_v46 }
0x10a6   : > { %v2080_v43 = vpop.f32.mrf.mxu0 }
0x10a7   : > { %v2081_v47 = vadd.f32 %v2245_v26, %v2080_v43 }
0x10a8   : > { %v2278_v2 = vpop.f32.mrf.mxu0 }
0x10a9   : > { %v2084_v4 = vmax.f32 %v2081_v47, 0.0 }
0x10ab   : > { %v2092_v49 = vmul.f32 %v2247_v3, %v2084_v4 }
0x10ad   : > { %v2094_v6 = vsel %vm2093_vm5, %v2092_v49, 0.0 }
0x10ae   : > { %2095 = vadd.xlane.f32.xlu0 %v2094_v6 }
0x1137   : > { %v2096_v8 = vpop.xlane.xlu0 %2095 }
0x1138   : > { %v2104_v10 = vadd.f32 %v2248_v7, %v2096_v8 }
0x113a   : > { %v2105_v11 = vsub.f32 0.0, %v2104_v10 }
0x113c   : > { %v2106_v12 = vmul.f32 1.442695, %v2105_v11 }
0x113e   : > { %2440 = vpow2.f32 %v2106_v12 }
0x114b   : > { %v2441_v15 = vpop.eup %2440 }
0x114c   : > { %v2108_v16 = vadd.f32 1.0, %v2441_v15 }
0x114e   : > { %2442 = vrcp.f32 %v2108_v16 }
0x115b   : > { %v2443_v17 = vpop.eup %2442 }
0x115c   : > { %2111 = vst.msk [vmem:[%s453_s11] sm:$0xff] %vm2110_vm6, %v2443_v17 }
0x115d PF: > { %s21_s15 = sadd.s32 1, %s2483_s15   ;;  %s3027_s11 = smov %s2471_s12 }
0x115e   : > { %p18_p10 = scmp.ge.s32.totalorder %s21_s15, 4   ;;  %s3028_s12 = smov %s2578_s18 }
0x115f   : > { %s3029_s13 = smov %s2479_s14  ;;  %s3030_s14 = smov %s3032_s8 }
0x1160   :  { %20 = sbr.rel (!%p18_p10) target bundleno = 6 (0x6), region = 154 }

</bundles_post_ra>
